<compile_context>
chip_gen: v5e
topology: v5e:2x2
jax: 0.10.0
libtpu: 0.0.40
codegen_flags: <defaults>
</compile_context>

<pallas_src>
import jax
import jax.numpy as jnp
from jax.experimental import pallas as pl
from jax.experimental.pallas import tpu as pltpu

_MB = 1024 * 1024


# ----------------------------------------------------------------------------- kernel
def _gated_ffn_kernel(x_ref, w1_ref, b1_ref, w3_ref, b3_ref, wo_ref, bo_ref,
                      o_ref, acc_ref):
    # x_ref: (tm, D)     w1_ref/w3_ref: (D, tH)    b1_ref/b3_ref: (1, tH)
    # wo_ref: (tH, D)    bo_ref: (1, D)            o_ref: (tm, D)
    # acc_ref: (tm, D) f32 scratch accumulating the out-projection over h.
    h = pl.program_id(1)

    @pl.when(h == 0)
    def _():
        acc_ref[...] = jnp.zeros_like(acc_ref)

    x = x_ref[...]                       # native dtype -> MXU, f32 accumulation
    h1 = jnp.dot(x, w1_ref[...], preferred_element_type=jnp.float32)
    h1 = h1 + b1_ref[...].astype(jnp.float32)
    h3 = jnp.dot(x, w3_ref[...], preferred_element_type=jnp.float32)
    h3 = h3 + b3_ref[...].astype(jnp.float32)

    # swish(h1) * h3 in f32, reusing h1 in place (minimal live (tm, tH) temps).
    h1 = h1 * jax.nn.sigmoid(h1)
    h1 = h1 * h3

    # TODO(synk): training-mode dropout omitted (eval-mode identity); it would
    # use pltpu.prng_seed + pltpu.stateful_bernoulli here.

    acc_ref[...] += jnp.dot(h1.astype(wo_ref.dtype), wo_ref[...],
                            preferred_element_type=jnp.float32)

    @pl.when(h == pl.num_programs(1) - 1)
    def _():
        o_ref[...] = (acc_ref[...]
                      + bo_ref[...].astype(jnp.float32)).astype(o_ref.dtype)


# ----------------------------------------------------------------------------- helpers
def _round_up(a, b):
    return (a + b - 1) // b * b


def _vmem_budget_bytes():
    """Per-generation VMEM budget (leaves headroom for compiler scratch)."""
    cap = 64 * _MB                    # conservative default (v7x per-TC VMEM)
    try:
        cap = int(pltpu.get_tpu_info().vmem_capacity_bytes)
    except Exception:
        pass
    return int(cap * 0.85)            # ~54 MiB on v7x, ~108 MiB on v5e/v6e


def _estimate_vmem(tm, tH, D, w_bytes, x_bytes, o_bytes, resident):
    wbuf = 1 if resident else 2                      # Buffered(1) when resident
    weights = wbuf * 3 * D * tH * w_bytes            # w1, w3, wo chunks
    biases = wbuf * (2 * tH + D) * w_bytes
    xio = 2 * tm * D * (x_bytes + o_bytes)           # double-buffered x / out
    acc = tm * D * 4
    inter = 3 * tm * tH * 4                          # f32 gating working set
    return weights + biases + xio + acc + inter


def _choose_tH(D, H, tm, w_bytes, x_bytes, o_bytes, budget):
    cands = [H] + [c for c in range(H - 128, 0, -128)
                   if H % c == 0 and c % 128 == 0]
    for c in cands:
        if _estimate_vmem(tm, c, D, w_bytes, x_bytes, o_bytes,
                          resident=(c == H)) <= budget:
            return c
    return cands[-1]


def _call(x2, w1, b1r, w3, b3r, wo, bor, *, N, D, H, tm, tH,
          single_buffer_weights, x_buffers, vmem_limit, cost):
    nH = H // tH
    w_mode = pl.Buffered(1) if single_buffer_weights else None
    x_mode = pl.Buffered(x_buffers) if x_buffers != 2 else None
    return pl.pallas_call(
        _gated_ffn_kernel,
        out_shape=jax.ShapeDtypeStruct((N, D), x2.dtype),
        grid_spec=pltpu.PrefetchScalarGridSpec(
            num_scalar_prefetch=0,
            grid=(pl.cdiv(N, tm), nH),
            in_specs=[
                pl.BlockSpec((tm, D), lambda i, h: (i, 0),
                             pipeline_mode=x_mode),        # x rows
                pl.BlockSpec((D, tH), lambda i, h: (0, h),
                             pipeline_mode=w_mode),         # w1 chunk
                pl.BlockSpec((1, tH), lambda i, h: (0, h),
                             pipeline_mode=w_mode),         # b1 chunk
                pl.BlockSpec((D, tH), lambda i, h: (0, h),
                             pipeline_mode=w_mode),         # w3 chunk
                pl.BlockSpec((1, tH), lambda i, h: (0, h),
                             pipeline_mode=w_mode),         # b3 chunk
                pl.BlockSpec((tH, D), lambda i, h: (h, 0),
                             pipeline_mode=w_mode),         # out_proj weight
                pl.BlockSpec((1, D), lambda i, h: (0, 0),
                             pipeline_mode=w_mode),         # out_proj bias
            ],
            out_specs=pl.BlockSpec((tm, D), lambda i, h: (i, 0)),
            scratch_shapes=[pltpu.VMEM((tm, D), jnp.float32)],
        ),
        compiler_params=pltpu.CompilerParams(
            dimension_semantics=("parallel", "arbitrary"),
            vmem_limit_bytes=int(vmem_limit)),
        cost_estimate=cost,
    )(x2, w1, b1r, w3, b3r, wo, bor)


# ----------------------------------------------------------------------------- wrapper
def gated_ffn(x, w1, b1, w3, b3, wo, bo, *, tm=256, tH=None, x_buffers=2):
    """GatedFFN forward.  x: (..., D).  w1, w3: (D, H); wo: (H, D);
    b1, b3: (H,); bo: (D,).  Weights are stored (in, out), i.e. transposed
    relative to torch.nn.Linear.weight.  Returns x.shape / x.dtype."""
    *lead, D = x.shape
    H = w1.shape[1]
    N = x.size // D
    x2 = x.reshape(N, D)

    # Row tile: as large as requested, but split so the row grid has >= 2
    # steps (v7x has two TensorCores) and kept 128-aligned when big (MXU fill).
    row_align = 8 if x.dtype.itemsize >= 4 else (16 if x.dtype.itemsize == 2 else 32)
    tm = max(row_align, min(tm, _round_up(N, row_align)))
    if N > tm:
        if tm >= 128:
            tm = _round_up(tm, 128)
    elif N > row_align:
        tm = _round_up(pl.cdiv(N, 2), row_align)

    # Hidden chunk: weights resident when they fit the per-generation VMEM
    # budget, otherwise H-tiled accumulation (mandatory for big FFNs on v7x).
    budget = _vmem_budget_bytes()
    w_bytes = w1.dtype.itemsize
    if tH is None:
        tH = _choose_tH(D, H, tm, w_bytes, x.dtype.itemsize, x.dtype.itemsize,
                        budget)
    assert H % tH == 0, "hidden chunk must divide the (rounded) hidden dim"
    resident = (tH == H)

    b1r = b1.reshape(1, H)
    b3r = b3.reshape(1, H)
    bor = bo.reshape(1, D)

    # Advisory cost estimate so XLA schedules neighbours sensibly.
    flops = 6 * N * D * H + 4 * N * H
    bytes_accessed = (x2.size * x2.dtype.itemsize
                      + 3 * D * H * w_bytes + (2 * H + D) * w_bytes
                      + N * D * x.dtype.itemsize)
    cost = pl.CostEstimate(flops=int(flops), transcendentals=int(N * H),
                           bytes_accessed=int(bytes_accessed))

    kwargs = dict(N=N, D=D, H=H, tm=tm, tH=tH, x_buffers=x_buffers,
                  vmem_limit=budget, cost=cost)
    try:
        out = _call(x2, w1, b1r, w3, b3r, wo, bor,
                    single_buffer_weights=resident, **kwargs)
    except Exception:
        if not resident:
            raise
        # Graceful fallback if this JAX build rejects pl.Buffered(1); the
        # constant index_map still means the weights are DMA'd only once.
        out = _call(x2, w1, b1r, w3, b3r, wo, bor,
                    single_buffer_weights=False, **kwargs)

    return out.reshape(*lead, D)


# ----------------------------------------------------------------------------- reference
def _reference(x, w1, b1, w3, b3, wo, bo):
    """Full-f32 GatedFFN forward (mirrors the PyTorch module in eval mode)."""
    hp = jax.lax.Precision.HIGHEST
    xf = x.astype(jnp.float32)
    h1 = jnp.dot(xf, w1.astype(jnp.float32), precision=hp) + b1.astype(jnp.float32)
    h3 = jnp.dot(xf, w3.astype(jnp.float32), precision=hp) + b3.astype(jnp.float32)
    g = h1 * jax.nn.sigmoid(h1) * h3
    return jnp.dot(g, wo.astype(jnp.float32), precision=hp) + bo.astype(jnp.float32)


def _module_hidden_dim(hidden_dim, multiple_of=256):
    """Same hidden_dim rounding as GatedFFN.__init__."""
    hidden_dim = int(2 * hidden_dim / 3)
    return multiple_of * ((hidden_dim + multiple_of - 1) // multiple_of)


def _make_params(key, D, H, dtype):
    ks = jax.random.split(key, 6)
    w1 = (0.02 * jax.random.normal(ks[0], (D, H))).astype(dtype)
    b1 = (0.01 * jax.random.normal(ks[1], (H,))).astype(dtype)
    w3 = (0.02 * jax.random.normal(ks[2], (D, H))).astype(dtype)
    b3 = (0.01 * jax.random.normal(ks[3], (H,))).astype(dtype)
    wo = (0.02 * jax.random.normal(ks[4], (H, D))).astype(dtype)
    bo = (0.01 * jax.random.normal(ks[5], (D,))).astype(dtype)
    return w1, b1, w3, b3, wo, bo


if __name__ == "__main__":
    key = jax.random.PRNGKey(0)

    # --- test 1: f32, lane-dense D, resident weights (single H chunk).
    B, T, D = 2, 8, 128
    H = _module_hidden_dim(192, multiple_of=256)            # -> 256
    kx, kp, key = jax.random.split(key, 3)
    x = jax.random.normal(kx, (B, T, D), dtype=jnp.float32)
    params = _make_params(kp, D, H, jnp.float32)
    out = jax.block_until_ready(gated_ffn(x, *params))
    ref = _reference(x, *params)
    assert out.shape == (B, T, D)
    assert jnp.allclose(out.astype(jnp.float32), ref, atol=2e-3, rtol=2e-3), \
        "f32 mismatch vs reference"

    # --- test 2: bf16, ragged N (partial final row block, no wrapper pad).
    B2, T2, D2 = 2, 200, 256
    H2 = _module_hidden_dim(384, multiple_of=256)           # -> 256
    kx2, kp2, key = jax.random.split(key, 3)
    x2 = jax.random.normal(kx2, (B2, T2, D2)).astype(jnp.bfloat16)
    params2 = _make_params(kp2, D2, H2, jnp.bfloat16)
    out2 = jax.block_until_ready(gated_ffn(x2, *params2))
    ref2 = _reference(x2, *params2)
    assert out2.shape == (B2, T2, D2)
    assert jnp.allclose(out2.astype(jnp.float32), ref2, atol=2e-2, rtol=2e-2), \
        "bf16 mismatch vs reference"

    # --- test 3: forced H-tiling (accumulator path) + ragged row count.
    B3, T3, D3 = 3, 5, 128
    H3 = _module_hidden_dim(600, multiple_of=256)           # -> 512
    kx3, kp3, key = jax.random.split(key, 3)
    x3 = jax.random.normal(kx3, (B3, T3, D3), dtype=jnp.float32)
    params3 = _make_params(kp3, D3, H3, jnp.float32)
    out3 = jax.block_until_ready(gated_ffn(x3, *params3, tH=128))
    ref3 = _reference(x3, *params3)
    assert out3.shape == (B3, T3, D3)
    assert jnp.allclose(out3.astype(jnp.float32), ref3, atol=2e-3, rtol=2e-3), \
        "H-tiled path mismatch vs reference"

    print("KERNEL_OK")
</pallas_src>

<mosaic_0001>
module attributes {stable_mosaic.version = 11 : i64} {
  func.func @_gated_ffn_kernel(%arg0: i32, %arg1: i32, %arg2: memref<8x128xf32, #tpu.memory_space<vmem>>, %arg3: memref<128x256xf32, #tpu.memory_space<vmem>>, %arg4: memref<1x256xf32, #tpu.memory_space<vmem>>, %arg5: memref<128x256xf32, #tpu.memory_space<vmem>>, %arg6: memref<1x256xf32, #tpu.memory_space<vmem>>, %arg7: memref<256x128xf32, #tpu.memory_space<vmem>>, %arg8: memref<1x128xf32, #tpu.memory_space<vmem>>, %arg9: memref<8x128xf32, #tpu.memory_space<vmem>>, %arg10: memref<8x128xf32, #tpu.memory_space<vmem>>) attributes {dimension_semantics = [#tpu.dimension_semantics<parallel>, #tpu.dimension_semantics<arbitrary>], iteration_bounds = array<i64: 2, 1>, scalar_prefetch = 0 : i64, scratch_operands = 1 : i64, tpu.core_type = #tpu.core_type<tc>, window_params = [{transform_indices = @transform_0, window_bounds = array<i64: 8, 128>}, {pipeline_mode = #tpu.pipeline_mode<synchronous>, transform_indices = @transform_1, window_bounds = array<i64: 128, 256>}, {pipeline_mode = #tpu.pipeline_mode<synchronous>, transform_indices = @transform_2, window_bounds = array<i64: 1, 256>}, {pipeline_mode = #tpu.pipeline_mode<synchronous>, transform_indices = @transform_3, window_bounds = array<i64: 128, 256>}, {pipeline_mode = #tpu.pipeline_mode<synchronous>, transform_indices = @transform_4, window_bounds = array<i64: 1, 256>}, {pipeline_mode = #tpu.pipeline_mode<synchronous>, transform_indices = @transform_5, window_bounds = array<i64: 256, 128>}, {pipeline_mode = #tpu.pipeline_mode<synchronous>, transform_indices = @transform_6, window_bounds = array<i64: 1, 128>}, {transform_indices = @transform_7, window_bounds = array<i64: 8, 128>}]} {
    %c0_i32 = arith.constant 0 : i32
    %0 = arith.cmpi eq, %arg1, %c0_i32 : i32
    %1 = arith.extui %0 : i1 to i32
    %c0_i32_0 = arith.constant 0 : i32
    %2 = arith.cmpi ne, %1, %c0_i32_0 : i32
    scf.if %2 {
      %cst_21 = arith.constant 0.000000e+00 : f32
      %29 = vector.broadcast %cst_21 : f32 to vector<8x128xf32>
      %c0_22 = arith.constant 0 : index
      %c0_23 = arith.constant 0 : index
      %30 = vector.load %arg10[%c0_22, %c0_23] : memref<8x128xf32, #tpu.memory_space<vmem>>, vector<8x128xf32>
      tpu.vector_store %arg10[%c0_22, %c0_23], %29 {strides = array<i32>} : memref<8x128xf32, #tpu.memory_space<vmem>>, vector<8x128xf32>,
    } else {
    }
    %c0 = arith.constant 0 : index
    %c0_1 = arith.constant 0 : index
    %3 = vector.load %arg2[%c0, %c0_1] : memref<8x128xf32, #tpu.memory_space<vmem>>, vector<8x128xf32>
    %c0_2 = arith.constant 0 : index
    %c0_3 = arith.constant 0 : index
    %4 = vector.load %arg3[%c0_2, %c0_3] : memref<128x256xf32, #tpu.memory_space<vmem>>, vector<128x256xf32>
    %cst = arith.constant dense<0.000000e+00> : vector<8x256xf32>
    %5 = tpu.matmul %3, %4, %cst {dimension_numbers = #tpu.dot_dimension_numbers<[1], [0], [0], [1], [0, 0, 1, 1], [], []>} : vector<8x128xf32>, vector<128x256xf32>, vector<8x256xf32> -> vector<8x256xf32>
    %c0_4 = arith.constant 0 : index
    %c0_5 = arith.constant 0 : index
    %6 = vector.load %arg4[%c0_4, %c0_5] : memref<1x256xf32, #tpu.memory_space<vmem>>, vector<1x256xf32>
    %7 = vector.broadcast %6 : vector<1x256xf32> to vector<8x256xf32>
    %8 = arith.addf %5, %7 : vector<8x256xf32>
    %c0_6 = arith.constant 0 : index
    %c0_7 = arith.constant 0 : index
    %9 = vector.load %arg5[%c0_6, %c0_7] : memref<128x256xf32, #tpu.memory_space<vmem>>, vector<128x256xf32>
    %cst_8 = arith.constant dense<0.000000e+00> : vector<8x256xf32>
    %10 = tpu.matmul %3, %9, %cst_8 {dimension_numbers = #tpu.dot_dimension_numbers<[1], [0], [0], [1], [0, 0, 1, 1], [], []>} : vector<8x128xf32>, vector<128x256xf32>, vector<8x256xf32> -> vector<8x256xf32>
    %c0_9 = arith.constant 0 : index
    %c0_10 = arith.constant 0 : index
    %11 = vector.load %arg6[%c0_9, %c0_10] : memref<1x256xf32, #tpu.memory_space<vmem>>, vector<1x256xf32>
    %12 = vector.broadcast %11 : vector<1x256xf32> to vector<8x256xf32>
    %13 = arith.addf %10, %12 : vector<8x256xf32>
    %14 = arith.negf %8 : vector<8x256xf32>
    %15 = math.exp %14 : vector<8x256xf32>
    %cst_11 = arith.constant 1.000000e+00 : f32
    %16 = vector.broadcast %cst_11 : f32 to vector<8x256xf32>
    %17 = arith.addf %16, %15 : vector<8x256xf32>
    %18 = arith.divf %16, %17 : vector<8x256xf32>
    %19 = arith.mulf %8, %18 : vector<8x256xf32>
    %20 = arith.mulf %19, %13 : vector<8x256xf32>
    %c0_12 = arith.constant 0 : index
    %c0_13 = arith.constant 0 : index
    %21 = vector.load %arg10[%c0_12, %c0_13] : memref<8x128xf32, #tpu.memory_space<vmem>>, vector<8x128xf32>
    %c0_14 = arith.constant 0 : index
    %c0_15 = arith.constant 0 : index
    %22 = vector.load %arg7[%c0_14, %c0_15] : memref<256x128xf32, #tpu.memory_space<vmem>>, vector<256x128xf32>
    %cst_16 = arith.constant dense<0.000000e+00> : vector<8x128xf32>
    %23 = tpu.matmul %20, %22, %cst_16 {dimension_numbers = #tpu.dot_dimension_numbers<[1], [0], [0], [1], [0, 0, 1, 1], [], []>} : vector<8x256xf32>, vector<256x128xf32>, vector<8x128xf32> -> vector<8x128xf32>
    %24 = arith.addf %21, %23 : vector<8x128xf32>
    %c0_17 = arith.constant 0 : index
    %c0_18 = arith.constant 0 : index
    %25 = vector.load %arg10[%c0_17, %c0_18] : memref<8x128xf32, #tpu.memory_space<vmem>>, vector<8x128xf32>
    tpu.vector_store %arg10[%c0_17, %c0_18], %24 {strides = array<i32>} : memref<8x128xf32, #tpu.memory_space<vmem>>, vector<8x128xf32>,
    %c0_i32_19 = arith.constant 0 : i32
    %26 = arith.cmpi eq, %arg1, %c0_i32_19 : i32
    %27 = arith.extui %26 : i1 to i32
    %c0_i32_20 = arith.constant 0 : i32
    %28 = arith.cmpi ne, %27, %c0_i32_20 : i32
    scf.if %28 {
      %c0_21 = arith.constant 0 : index
      %c0_22 = arith.constant 0 : index
      %29 = vector.load %arg10[%c0_21, %c0_22] : memref<8x128xf32, #tpu.memory_space<vmem>>, vector<8x128xf32>
      %c0_23 = arith.constant 0 : index
      %c0_24 = arith.constant 0 : index
      %30 = vector.load %arg8[%c0_23, %c0_24] : memref<1x128xf32, #tpu.memory_space<vmem>>, vector<1x128xf32>
      %31 = vector.broadcast %30 : vector<1x128xf32> to vector<8x128xf32>
      %32 = arith.addf %29, %31 : vector<8x128xf32>
      %c0_25 = arith.constant 0 : index
      %c0_26 = arith.constant 0 : index
      %33 = vector.load %arg9[%c0_25, %c0_26] : memref<8x128xf32, #tpu.memory_space<vmem>>, vector<8x128xf32>
      tpu.vector_store %arg9[%c0_25, %c0_26], %32 {strides = array<i32>} : memref<8x128xf32, #tpu.memory_space<vmem>>, vector<8x128xf32>,
    } else {
    }
    return
  }
  func.func @transform_0(%arg0: i32, %arg1: i32) -> (i32, i32) {
    %c0_i32 = arith.constant 0 : i32
    %c0_i32_0 = arith.constant 0 : i32
    return %arg0, %c0_i32 : i32, i32
  }
  func.func @transform_1(%arg0: i32, %arg1: i32) -> (i32, i32) {
    %c0_i32 = arith.constant 0 : i32
    %c0_i32_0 = arith.constant 0 : i32
    return %c0_i32, %arg1 : i32, i32
  }
  func.func @transform_2(%arg0: i32, %arg1: i32) -> (i32, i32) {
    %c0_i32 = arith.constant 0 : i32
    %c0_i32_0 = arith.constant 0 : i32
    return %c0_i32, %arg1 : i32, i32
  }
  func.func @transform_3(%arg0: i32, %arg1: i32) -> (i32, i32) {
    %c0_i32 = arith.constant 0 : i32
    %c0_i32_0 = arith.constant 0 : i32
    return %c0_i32, %arg1 : i32, i32
  }
  func.func @transform_4(%arg0: i32, %arg1: i32) -> (i32, i32) {
    %c0_i32 = arith.constant 0 : i32
    %c0_i32_0 = arith.constant 0 : i32
    return %c0_i32, %arg1 : i32, i32
  }
  func.func @transform_5(%arg0: i32, %arg1: i32) -> (i32, i32) {
    %c0_i32 = arith.constant 0 : i32
    %c0_i32_0 = arith.constant 0 : i32
    return %arg1, %c0_i32 : i32, i32
  }
  func.func @transform_6(%arg0: i32, %arg1: i32) -> (i32, i32) {
    %c0_i32 = arith.constant 0 : i32
    %c0_i32_0 = arith.constant 0 : i32
    %c0_i32_1 = arith.constant 0 : i32
    return %c0_i32, %c0_i32_0 : i32, i32
  }
  func.func @transform_7(%arg0: i32, %arg1: i32) -> (i32, i32) {
    %c0_i32 = arith.constant 0 : i32
    %c0_i32_0 = arith.constant 0 : i32
    return %arg0, %c0_i32 : i32, i32
  }
}

module attributes {stable_mosaic.version = 11 : i64} {
  func.func @_gated_ffn_kernel(%arg0: i32, %arg1: i32, %arg2: memref<8x128xf32, #tpu.memory_space<vmem>>, %arg3: memref<128x256xf32, #tpu.memory_space<vmem>>, %arg4: memref<1x256xf32, #tpu.memory_space<vmem>>, %arg5: memref<128x256xf32, #tpu.memory_space<vmem>>, %arg6: memref<1x256xf32, #tpu.memory_space<vmem>>, %arg7: memref<256x128xf32, #tpu.memory_space<vmem>>, %arg8: memref<1x128xf32, #tpu.memory_space<vmem>>, %arg9: memref<8x128xf32, #tpu.memory_space<vmem>>, %arg10: memref<8x128xf32, #tpu.memory_space<vmem>>) attributes {dimension_semantics = [#tpu.dimension_semantics<parallel>, #tpu.dimension_semantics<arbitrary>], iteration_bounds = array<i64: 2, 1>, scalar_prefetch = 0 : i64, scratch_operands = 1 : i64, tpu.core_type = #tpu.core_type<tc>, window_params = [{transform_indices = @transform_0, window_bounds = array<i64: 8, 128>}, {transform_indices = @transform_1, window_bounds = array<i64: 128, 256>}, {transform_indices = @transform_2, window_bounds = array<i64: 1, 256>}, {transform_indices = @transform_3, window_bounds = array<i64: 128, 256>}, {transform_indices = @transform_4, window_bounds = array<i64: 1, 256>}, {transform_indices = @transform_5, window_bounds = array<i64: 256, 128>}, {pipeline_mode = #tpu.pipeline_mode<synchronous>, transform_indices = @transform_6, window_bounds = array<i64: 1, 128>}, {transform_indices = @transform_7, window_bounds = array<i64: 8, 128>}]} {
    %c0_i32 = arith.constant 0 : i32
    %0 = arith.cmpi eq, %arg1, %c0_i32 : i32
    %1 = arith.extui %0 : i1 to i32
    %c0_i32_0 = arith.constant 0 : i32
    %2 = arith.cmpi ne, %1, %c0_i32_0 : i32
    scf.if %2 {
      %cst_21 = arith.constant 0.000000e+00 : f32
      %29 = vector.broadcast %cst_21 : f32 to vector<8x128xf32>
      %c0_22 = arith.constant 0 : index
      %c0_23 = arith.constant 0 : index
      %30 = vector.load %arg10[%c0_22, %c0_23] : memref<8x128xf32, #tpu.memory_space<vmem>>, vector<8x128xf32>
      tpu.vector_store %arg10[%c0_22, %c0_23], %29 {strides = array<i32>} : memref<8x128xf32, #tpu.memory_space<vmem>>, vector<8x128xf32>,
    } else {
    }
    %c0 = arith.constant 0 : index
    %c0_1 = arith.constant 0 : index
    %3 = vector.load %arg2[%c0, %c0_1] : memref<8x128xf32, #tpu.memory_space<vmem>>, vector<8x128xf32>
    %c0_2 = arith.constant 0 : index
    %c0_3 = arith.constant 0 : index
    %4 = vector.load %arg3[%c0_2, %c0_3] : memref<128x256xf32, #tpu.memory_space<vmem>>, vector<128x256xf32>
    %cst = arith.constant dense<0.000000e+00> : vector<8x256xf32>
    %5 = tpu.matmul %3, %4, %cst {dimension_numbers = #tpu.dot_dimension_numbers<[1], [0], [0], [1], [0, 0, 1, 1], [], []>} : vector<8x128xf32>, vector<128x256xf32>, vector<8x256xf32> -> vector<8x256xf32>
    %c0_4 = arith.constant 0 : index
    %c0_5 = arith.constant 0 : index
    %6 = vector.load %arg4[%c0_4, %c0_5] : memref<1x256xf32, #tpu.memory_space<vmem>>, vector<1x256xf32>
    %7 = vector.broadcast %6 : vector<1x256xf32> to vector<8x256xf32>
    %8 = arith.addf %5, %7 : vector<8x256xf32>
    %c0_6 = arith.constant 0 : index
    %c0_7 = arith.constant 0 : index
    %9 = vector.load %arg5[%c0_6, %c0_7] : memref<128x256xf32, #tpu.memory_space<vmem>>, vector<128x256xf32>
    %cst_8 = arith.constant dense<0.000000e+00> : vector<8x256xf32>
    %10 = tpu.matmul %3, %9, %cst_8 {dimension_numbers = #tpu.dot_dimension_numbers<[1], [0], [0], [1], [0, 0, 1, 1], [], []>} : vector<8x128xf32>, vector<128x256xf32>, vector<8x256xf32> -> vector<8x256xf32>
    %c0_9 = arith.constant 0 : index
    %c0_10 = arith.constant 0 : index
    %11 = vector.load %arg6[%c0_9, %c0_10] : memref<1x256xf32, #tpu.memory_space<vmem>>, vector<1x256xf32>
    %12 = vector.broadcast %11 : vector<1x256xf32> to vector<8x256xf32>
    %13 = arith.addf %10, %12 : vector<8x256xf32>
    %14 = arith.negf %8 : vector<8x256xf32>
    %15 = math.exp %14 : vector<8x256xf32>
    %cst_11 = arith.constant 1.000000e+00 : f32
    %16 = vector.broadcast %cst_11 : f32 to vector<8x256xf32>
    %17 = arith.addf %16, %15 : vector<8x256xf32>
    %18 = arith.divf %16, %17 : vector<8x256xf32>
    %19 = arith.mulf %8, %18 : vector<8x256xf32>
    %20 = arith.mulf %19, %13 : vector<8x256xf32>
    %c0_12 = arith.constant 0 : index
    %c0_13 = arith.constant 0 : index
    %21 = vector.load %arg10[%c0_12, %c0_13] : memref<8x128xf32, #tpu.memory_space<vmem>>, vector<8x128xf32>
    %c0_14 = arith.constant 0 : index
    %c0_15 = arith.constant 0 : index
    %22 = vector.load %arg7[%c0_14, %c0_15] : memref<256x128xf32, #tpu.memory_space<vmem>>, vector<256x128xf32>
    %cst_16 = arith.constant dense<0.000000e+00> : vector<8x128xf32>
    %23 = tpu.matmul %20, %22, %cst_16 {dimension_numbers = #tpu.dot_dimension_numbers<[1], [0], [0], [1], [0, 0, 1, 1], [], []>} : vector<8x256xf32>, vector<256x128xf32>, vector<8x128xf32> -> vector<8x128xf32>
    %24 = arith.addf %21, %23 : vector<8x128xf32>
    %c0_17 = arith.constant 0 : index
    %c0_18 = arith.constant 0 : index
    %25 = vector.load %arg10[%c0_17, %c0_18] : memref<8x128xf32, #tpu.memory_space<vmem>>, vector<8x128xf32>
    tpu.vector_store %arg10[%c0_17, %c0_18], %24 {strides = array<i32>} : memref<8x128xf32, #tpu.memory_space<vmem>>, vector<8x128xf32>,
    %c0_i32_19 = arith.constant 0 : i32
    %26 = arith.cmpi eq, %arg1, %c0_i32_19 : i32
    %27 = arith.extui %26 : i1 to i32
    %c0_i32_20 = arith.constant 0 : i32
    %28 = arith.cmpi ne, %27, %c0_i32_20 : i32
    scf.if %28 {
      %c0_21 = arith.constant 0 : index
      %c0_22 = arith.constant 0 : index
      %29 = vector.load %arg10[%c0_21, %c0_22] : memref<8x128xf32, #tpu.memory_space<vmem>>, vector<8x128xf32>
      %c0_23 = arith.constant 0 : index
      %c0_24 = arith.constant 0 : index
      %30 = vector.load %arg8[%c0_23, %c0_24] : memref<1x128xf32, #tpu.memory_space<vmem>>, vector<1x128xf32>
      %31 = vector.broadcast %30 : vector<1x128xf32> to vector<8x128xf32>
      %32 = arith.addf %29, %31 : vector<8x128xf32>
      %c0_25 = arith.constant 0 : index
      %c0_26 = arith.constant 0 : index
      %33 = vector.load %arg9[%c0_25, %c0_26] : memref<8x128xf32, #tpu.memory_space<vmem>>, vector<8x128xf32>
      tpu.vector_store %arg9[%c0_25, %c0_26], %32 {strides = array<i32>} : memref<8x128xf32, #tpu.memory_space<vmem>>, vector<8x128xf32>,
    } else {
    }
    return
  }
  func.func @transform_0(%arg0: i32, %arg1: i32) -> (i32, i32) {
    %c0_i32 = arith.constant 0 : i32
    %c0_i32_0 = arith.constant 0 : i32
    return %arg0, %c0_i32 : i32, i32
  }
  func.func @transform_1(%arg0: i32, %arg1: i32) -> (i32, i32) {
    %c0_i32 = arith.constant 0 : i32
    %c0_i32_0 = arith.constant 0 : i32
    return %c0_i32, %arg1 : i32, i32
  }
  func.func @transform_2(%arg0: i32, %arg1: i32) -> (i32, i32) {
    %c0_i32 = arith.constant 0 : i32
    %c0_i32_0 = arith.constant 0 : i32
    return %c0_i32, %arg1 : i32, i32
  }
  func.func @transform_3(%arg0: i32, %arg1: i32) -> (i32, i32) {
    %c0_i32 = arith.constant 0 : i32
    %c0_i32_0 = arith.constant 0 : i32
    return %c0_i32, %arg1 : i32, i32
  }
  func.func @transform_4(%arg0: i32, %arg1: i32) -> (i32, i32) {
    %c0_i32 = arith.constant 0 : i32
    %c0_i32_0 = arith.constant 0 : i32
    return %c0_i32, %arg1 : i32, i32
  }
  func.func @transform_5(%arg0: i32, %arg1: i32) -> (i32, i32) {
    %c0_i32 = arith.constant 0 : i32
    %c0_i32_0 = arith.constant 0 : i32
    return %arg1, %c0_i32 : i32, i32
  }
  func.func @transform_6(%arg0: i32, %arg1: i32) -> (i32, i32) {
    %c0_i32 = arith.constant 0 : i32
    %c0_i32_0 = arith.constant 0 : i32
    %c0_i32_1 = arith.constant 0 : i32
    return %c0_i32, %c0_i32_0 : i32, i32
  }
  func.func @transform_7(%arg0: i32, %arg1: i32) -> (i32, i32) {
    %c0_i32 = arith.constant 0 : i32
    %c0_i32_0 = arith.constant 0 : i32
    return %arg0, %c0_i32 : i32, i32
  }
}

</mosaic_0001>

<bundles_post_ra>
// kernel: tpu_custom_call.1
= control target key start
LH: loop header
LB: loop body
LE: loop exit
PB: predicated region body
PF: predicated region fallthrough
CT: control target
= control target key end

     0   :  { %s1476_s0 = inlined_call_operand.hbm [shape: f32[16,128], index: 0, kind: input, shape index: {}]   ;;  %s1477_s1 = inlined_call_operand.hbm [shape: f32[128,256], index: 1, kind: input, shape index: {}]   ;;  %s1478_s2 = inlined_call_operand.hbm [shape: f32[1,256], index: 2, kind: input, shape index: {}]   ;;  %s1479_s3 = inlined_call_operand.hbm [shape: f32[128,256], index: 3, kind: input, shape index: {}]   ;;  %s1480_s4 = inlined_call_operand.vmem [shape: f32[1,256], index: 4, kind: input, shape index: {}]   ;;  %s1481_s5 = inlined_call_operand.hbm [shape: f32[256,128], index: 5, kind: input, shape index: {}]   ;;  %s1482_s6 = inlined_call_operand.vmem [shape: f32[1,128], index: 6, kind: input, shape index: {}]   ;;  %s1483_s7 = inlined_call_operand.hbm [shape: f32[16,128], index: 7, kind: output, shape index: {}]  }
   0x1   :  { %1484 = sst [smem:[#allocation17_spill]] %s1477_s1 }
   0x2   :  { %12 = vsyncpa [#allocation4], 0 }
   0x3   :  { %14 = vsyncpa [#allocation4 + $0x1], 0 }
   0x4   :  { %15 = vsyncpa [#allocation7], 0 }
   0x5   :  { %16 = vsyncpa [#allocation10], 0 }
   0x6   :  { %17 = vsyncpa [#allocation5], 0 }
   0x7   :  { %19 = vsyncpa [#allocation5 + $0x1], 0  ;;  %s1297_s24 = smov 0   ;;  %s1299_s25 = smov 0  }
   0x8   :  { %s1301_s26 = smov 0   ;;  %s1303_s27 = smov 0  }
   0x9   :  { %s1305_s28 = smov 0   ;;  %s1307_s29 = smov 0  }
   0xa LB: > { %s867_s30 = sadd.s32 4294967295, %s1247_s29   ;;  %p869_p0 = scmp.ge.s32.totalorder %s1247_s29, 1  ;;  %s1247_s29 = sphi %s1307_s29, %s25_s29   ;;  %s1243_s28 = sphi %s1305_s28, %s1496_s28   ;;  %s1239_s27 = sphi %s1303_s27, %s1495_s27   ;;  %s1235_s26 = sphi %s1301_s26, %s1494_s26   ;;  %s1231_s25 = sphi %s1299_s25, %s1493_s25   ;;  %s1227_s24 = sphi %s1297_s24, %s1492_s24  }
   0xb   : > { %p1331_p1 = scmp.eq.s32.totalorder %s867_s30, 0  ;;  %p245_p2 = scmp.lt.s32.totalorder %s1247_s29, 3 }
   0xc   : > { %s1486_s1 = sld [smem:[#allocation17_spill]]  ;;  %s1249_s13 = smov [#allocation6]  }
   0xd   : > { %p1339_p3 = pnand %p869_p0, %p245_p2  ;;  %s261_s14 = sshll.u32 %s1249_s13, 4  ;;  %s262_s14 = int_to_ptr.vmem [resolvable:$true] %s261_s14 }
   0xe   : > { %p875_p6 = scmp.ge.s32.totalorder %s1247_s29, 2  ;;  %s290_s18 = sshll.u32 %s1479_s3, 4  ;;  %s291_s18 = int_to_ptr.hbm [resolvable:$true] %s290_s18 }
   0xf   : > { %p911_p4 = pneg %p1339_p3  ;;  %s1250_s19 = smov 256  }
  0x10   : > { %s1251_s20 = smov 16   ;;  %s1252_s21 = smov [#allocation9]  }
  0x11   : > { %p1347_p5 = pnand %p911_p4, %p1331_p1  ;;  %s292_s22 = sshll.u32 %s1252_s21, 4  ;;  %s293_s22 = int_to_ptr.vmem [resolvable:$true] %s292_s22 }
  0x12   : > { %s259_s11 = sshll.u32 %s1486_s1, 4  ;;  %s276_s10 = sshll.u32 %s1478_s2, 4  ;;  %s260_s11 = int_to_ptr.hbm [resolvable:$true] %s259_s11  ;;  %s277_s10 = int_to_ptr.hbm [resolvable:$true] %s276_s10 }
  0x13   : > { %914 = dma.hbm_to_vmem [thread:$0]  (!%p1347_p5), %s260_s11, 4096, %s262_s14, [#allocation7], %s1250_s19, %s1250_s19, %s1251_s20  }
  0x14   : > { %920 = dma.hbm_to_vmem [thread:$0]  (!%p1347_p5), %s291_s18, 4096, %s293_s22, [#allocation10], %s1250_s19, %s1250_s19, %s1251_s20  }
  0x15   : > { %s315_s17 = sshll.u32 %s1481_s5, 4  ;;  %s1253_s11 = smov [#allocation8]   ;;  %s316_s17 = int_to_ptr.hbm [resolvable:$true] %s315_s17 }
  0x16   : > { %s278_s14 = sshll.u32 %s1253_s11, 4  ;;  %s1254_s21 = smov [#allocation11]   ;;  %s279_s14 = int_to_ptr.vmem [resolvable:$true] %s278_s14 }
  0x17   : > { %917 = dma.hbm_to_vmem [thread:$0]  (!%p1347_p5), %s277_s10, 32, %s279_s14, [#allocation7]  }
  0x18   : > { %s317_s18 = sshll.u32 %s1254_s21, 4  ;;  %s1255_s19 = smov 128   ;;  %s318_s18 = int_to_ptr.vmem [resolvable:$true] %s317_s18 }
  0x19   : > { %s1256_s20 = smov 8   ;;  %s37_s22 = sadd.s32 1, %s1243_s28 }
  0x1a   : > { %923 = dma.hbm_to_vmem [thread:$0]  (!%p1347_p5), %s316_s17, 4096, %s318_s18, [#allocation10], %s1255_s19, %s1255_s19, %s1256_s20  }
  0x1b   : > { %s868_s23 = sadd.s32 4294967294, %s1247_s29   ;;  %p39_p7 = scmp.ge.s32.totalorder %s37_s22, 2 }
  0x1c   : > { %s44_s9 = sadd.s32 1, %s1235_s26  ;;  %p51_p8 = scmp.ne.s32.totalorder %s1235_s26, %s1231_s25 }
  0x1d   : > { %s1498_s22 = smov (%p39_p7, %s37_s22), 0  ;;  %p52_p9 = scmp.eq.s32.totalorder %s1247_s29, 0 }
  0x1e   : > { %p57_p10 = scmp.ne.s32.totalorder %s1231_s25, %s1227_s24  ;;  %s41_s10 = ssub.s32 %s1243_s28, %s1498_s22 }
  0x1f   : > { %p232_p11 = scmp.eq.s32.totalorder %s867_s30, 1  ;;  %p42_p12 = scmp.eq.s32.totalorder %s41_s10, 0 }
  0x20   : > { %p1385_p13 = por %p1331_p1, %p57_p10  ;;  %p238_p2 = scmp.eq.s32.totalorder %s868_s23, 1 }
  0x21   : > { %p1389_p0 = por %p232_p11, %p51_p8  ;;  %p53_p4 = por %p52_p9, %p51_p8 }
  0x22   : > { %s1394_s16 = scalar_select %p42_p12, %s1235_s26, %s44_s9  }
  0x23   : > { %p1396_p5 = por %p238_p2, %p57_p10  ;;  %s334_s11 = sand.u32 1, %s1235_s26  }
  0x24   : > { %s877_s30 = sshll.u32 %s1243_s28, 3  ;;  %p936_p7 = scmp.lt.s32.totalorder %s1247_s29, 2 }
  0x25   : > { %s876_s14 = sshll.u32 %s334_s11, 3  ;;  %s342_s19 = scalar_lea.hbm %s1476_s0, %s877_s30 }
  0x26   : > { %s344_s20 = sshll.u32 %s342_s19, 4  ;;  %s338_s10 = scalar_lea.vmem [#allocation3], %s876_s14  ;;  %s345_s20 = int_to_ptr.hbm [resolvable:$true] %s344_s20 }
  0x27   : > { %s346_s1 = sshll.u32 %s338_s10, 4  ;;  %p925_p11 = pnand %p936_p7, %p53_p4  ;;  %s347_s1 = int_to_ptr.vmem [resolvable:$true] %s346_s1 }
  0x28   : > { %s335_s23 = scalar_lea.sflag [#allocation4], %s334_s11  ;;  %355 = sbr.rel (%p1339_p3) target bundleno = 376 (0x178), region = 48 }
  0x29   : > { %927 = dma.hbm_to_vmem [thread:$0]  (!%p925_p11), %s345_s20, 128, %s347_s1, %s335_s23  }
  0x2a   : > { %s1409_s9 = sand.u32 (!%p1339_p3), 1, %s1231_s25  }
  0x2b   : > { %s879_s21 = sshll.u32 (!%p1339_p3), %s1409_s9, 3  ;;  %s358_s30 = scalar_lea.sflag (!%p1339_p3), [#allocation4], %s1409_s9 }
  0x2c   : > { %s1415_s14 = scalar_lea.vmem (!%p1339_p3), [#allocation3], %s879_s21 }
  0x2d   : > { %1210 = dma.done.wait (%p1385_p13), %s358_s30, 128  }
  0x2e   : > { %1212 = vsyncadd (%p1385_p13), %s358_s30, 4294967168 }
  0x2f   : > { %1214 = dma.done.wait (%p1331_p1), [#allocation7], 4128  }
  0x30   : > { %1216 = vsyncadd (%p1331_p1), [#allocation7], 4294963168 }
  0x31   : > { %1218 = dma.done.wait (%p1331_p1), [#allocation10], 8192  }
  0x32   : > { %1220 = vsyncadd (%p1331_p1), [#allocation10], 4294959104  ;;  %v462_v0 = vld [vmem:[#allocation6 + $0xf0] sm:$0xff]  ;;  %v463_v1 = vld [vmem:[#allocation6 + $0xf8] sm:$0xff]  ;;  %s888_s12 = sshll.u32 %s1239_s27, 3  ;;  %s416_s10 = scalar_lea.vmem [#allocation12], %s879_s21 }
  0x33   : > { %v460_v2 = vld [vmem:[#allocation6 + $0xe0] sm:$0xff]  ;;  %470 = vmatpush.msra.mxu0 %v462_v0  ;;  %490 = vmatpush.msra.mxu1 %v463_v1  ;;  %v461_v3 = vld [vmem:[#allocation6 + $0xe8] sm:$0xff]  ;;  %v458_v4 = vld [vmem:[#allocation6 + $0xd0] sm:$0xff]  ;;  %s726_s18 = scalar_lea.hbm %s1483_s7, %s888_s12  ;;  %s728_s23 = sshll.u32 %s416_s10, 4  ;;  %s729_s23 = int_to_ptr.vmem [resolvable:$true] %s728_s23 }
  0x34   : > { %v459_v5 = vld [vmem:[#allocation6 + $0xd8] sm:$0xff]  ;;  %v456_v6 = vld [vmem:[#allocation6 + $0xc0] sm:$0xff]  ;;  %v457_v7 = vld [vmem:[#allocation6 + $0xc8] sm:$0xff]  ;;  %s730_s30 = sshll.u32 %s726_s18, 4  ;;  %s716_s27 = scalar_lea.sflag [#allocation5], %s1409_s9  ;;  %s731_s30 = int_to_ptr.hbm [resolvable:$true] %s730_s30 }
  0x35   : > { %471 = vmatpush.msra.mxu0 %v460_v2  ;;  %491 = vmatpush.msra.mxu1 %v461_v3  ;;  %v454_v8 = vld [vmem:[#allocation6 + $0xb0] sm:$0xff]  ;;  %v455_v9 = vld [vmem:[#allocation6 + $0xb8] sm:$0xff]  ;;  %v452_v10 = vld [vmem:[#allocation6 + $0xa0] sm:$0xff]  ;;  %s1177_s15 = scalar_lea.hbm %s1483_s7, 16 }
  0x36   : > { %v453_v11 = vld [vmem:[#allocation6 + $0xa8] sm:$0xff]  ;;  %v540_v12 = vld [vmem:[#allocation9 + $0xf0] sm:$0xff]  ;;  %v541_v14 = vld [vmem:[#allocation9 + $0xf8] sm:$0xff] }
  0x37   : > { %472 = vmatpush.msra.mxu0 %v458_v4  ;;  %492 = vmatpush.msra.mxu1 %v459_v5  ;;  %v450_v13 = vld [vmem:[#allocation6 + $0x90] sm:$0xff]  ;;  %v451_v15 = vld [vmem:[#allocation6 + $0x98] sm:$0xff]  ;;  %v538_v16 = vld [vmem:[#allocation9 + $0xe0] sm:$0xff] }
  0x38   : > { %548 = vmatpush.msra.mxu2 %v540_v12  ;;  %568 = vmatpush.msra.mxu3 %v541_v14  ;;  %v539_v17 = vld [vmem:[#allocation9 + $0xe8] sm:$0xff]  ;;  %v536_v18 = vld [vmem:[#allocation9 + $0xd0] sm:$0xff]  ;;  %v537_v19 = vld [vmem:[#allocation9 + $0xd8] sm:$0xff] }
  0x39   : > { %473 = vmatpush.msra.mxu0 %v456_v6  ;;  %493 = vmatpush.msra.mxu1 %v457_v7  ;;  %v448_v20 = vld [vmem:[#allocation6 + $0x80] sm:$0xff]  ;;  %v449_v21 = vld [vmem:[#allocation6 + $0x88] sm:$0xff]  ;;  %v446_v24 = vld [vmem:[#allocation6 + $0x70] sm:$0xff] }
  0x3a   : > { %549 = vmatpush.msra.mxu2 %v538_v16  ;;  %569 = vmatpush.msra.mxu3 %v539_v17  ;;  %v534_v22 = vld [vmem:[#allocation9 + $0xc0] sm:$0xff]  ;;  %v535_v23 = vld [vmem:[#allocation9 + $0xc8] sm:$0xff]  ;;  %v447_v25 = vld [vmem:[#allocation6 + $0x78] sm:$0xff] }
  0x3b   : > { %474 = vmatpush.msra.mxu0 %v454_v8  ;;  %494 = vmatpush.msra.mxu1 %v455_v9  ;;  %v532_v26 = vld [vmem:[#allocation9 + $0xb0] sm:$0xff]  ;;  %v533_v27 = vld [vmem:[#allocation9 + $0xb8] sm:$0xff]  ;;  %v445_v29 = vld [vmem:[#allocation6 + $0x68] sm:$0xff] }
  0x3c   : > { %550 = vmatpush.msra.mxu2 %v536_v18  ;;  %570 = vmatpush.msra.mxu3 %v537_v19  ;;  %v444_v28 = vld [vmem:[#allocation6 + $0x60] sm:$0xff]  ;;  %v531_v31 = vld [vmem:[#allocation9 + $0xa8] sm:$0xff]  ;;  %v443_v33 = vld [vmem:[#allocation6 + $0x58] sm:$0xff] }
  0x3d   : > { %475 = vmatpush.msra.mxu0 %v452_v10  ;;  %495 = vmatpush.msra.mxu1 %v453_v11  ;;  %v530_v30 = vld [vmem:[#allocation9 + $0xa0] sm:$0xff]  ;;  %v442_v32 = vld [vmem:[#allocation6 + $0x50] sm:$0xff]  ;;  %v529_v35 = vld [vmem:[#allocation9 + $0x98] sm:$0xff] }
  0x3e   : > { %551 = vmatpush.msra.mxu2 %v534_v22  ;;  %571 = vmatpush.msra.mxu3 %v535_v23  ;;  %v528_v34 = vld [vmem:[#allocation9 + $0x90] sm:$0xff]  ;;  %v440_v36 = vld [vmem:[#allocation6 + $0x40] sm:$0xff]  ;;  %v441_v37 = vld [vmem:[#allocation6 + $0x48] sm:$0xff] }
  0x3f   : > { %476 = vmatpush.msra.mxu0 %v450_v13  ;;  %496 = vmatpush.msra.mxu1 %v451_v15  ;;  %v526_v38 = vld [vmem:[#allocation9 + $0x80] sm:$0xff]  ;;  %v527_v39 = vld [vmem:[#allocation9 + $0x88] sm:$0xff]  ;;  %v439_v41 = vld [vmem:[#allocation6 + $0x38] sm:$0xff] }
  0x40   : > { %552 = vmatpush.msra.mxu2 %v532_v26  ;;  %572 = vmatpush.msra.mxu3 %v533_v27  ;;  %v438_v40 = vld [vmem:[#allocation6 + $0x30] sm:$0xff]  ;;  %v525_v43 = vld [vmem:[#allocation9 + $0x78] sm:$0xff]  ;;  %v437_v45 = vld [vmem:[#allocation6 + $0x28] sm:$0xff] }
  0x41   : > { %477 = vmatpush.msra.mxu0 %v448_v20  ;;  %497 = vmatpush.msra.mxu1 %v449_v21  ;;  %v524_v42 = vld [vmem:[#allocation9 + $0x70] sm:$0xff]  ;;  %v436_v44 = vld [vmem:[#allocation6 + $0x20] sm:$0xff]  ;;  %v523_v47 = vld [vmem:[#allocation9 + $0x68] sm:$0xff] }
  0x42   : > { %553 = vmatpush.msra.mxu2 %v530_v30  ;;  %573 = vmatpush.msra.mxu3 %v531_v31  ;;  %v522_v46 = vld [vmem:[#allocation9 + $0x60] sm:$0xff]  ;;  %v434_v48 = vld [vmem:[#allocation6 + $0x10] sm:$0xff]  ;;  %v435_v49 = vld [vmem:[#allocation6 + $0x18] sm:$0xff] }
  0x43   : > { %478 = vmatpush.msra.mxu0 %v446_v24  ;;  %498 = vmatpush.msra.mxu1 %v447_v25  ;;  %v520_v50 = vld [vmem:[#allocation9 + $0x50] sm:$0xff]  ;;  %v521_v51 = vld [vmem:[#allocation9 + $0x58] sm:$0xff]  ;;  %v433_v53 = vld [vmem:[#allocation6 + $0x8] sm:$0xff] }
  0x44   : > { %554 = vmatpush.msra.mxu2 %v528_v34  ;;  %574 = vmatpush.msra.mxu3 %v529_v35  ;;  %v432_v52 = vld [vmem:[#allocation6] sm:$0xff]  ;;  %v431_v54 = vld [vmem:[%s1415_s14] sm:$0xff]  ;;  %s1171_s14 = sshra.s32 %s731_s30, 4  ;;  %s1172_s14 = int_to_ptr.hbm [resolvable:$true] %s1171_s14 }
  0x45   : > { %479 = vmatpush.msra.mxu0 %v444_v28  ;;  %499 = vmatpush.msra.mxu1 %v445_v29  ;;  %v518_v55 = vld [vmem:[#allocation9 + $0x40] sm:$0xff]  ;;  %v519_v56 = vld [vmem:[#allocation9 + $0x48] sm:$0xff]  ;;  %v516_v57 = vld [vmem:[#allocation9 + $0x30] sm:$0xff]  ;;  %s1173_s1 = scalar_lea.hbm %s1172_s14, 8  ;;  %p1178_p9 = scmp.lt.s32.totalorder %s1172_s14, %s1483_s7 }
  0x46   : > { %555 = vmatpush.msra.mxu2 %v526_v38  ;;  %575 = vmatpush.msra.mxu3 %v527_v39  ;;  %v517_v58 = vld [vmem:[#allocation9 + $0x38] sm:$0xff]  ;;  %v514_v59 = vld [vmem:[#allocation9 + $0x20] sm:$0xff]  ;;  %v515_v60 = vld [vmem:[#allocation9 + $0x28] sm:$0xff]  ;;  %p1174_p1 = scmp.ne.s32.totalorder %s1172_s14, %s1173_s1  ;;  %p1179_p10 = scmp.lt.s32.totalorder %s1177_s15, %s1173_s1 }
  0x47   : > { %480 = vmatpush.msra.mxu0 %v442_v32  ;;  %500 = vmatpush.msra.mxu1 %v443_v33  ;;  %v512_v61 = vld [vmem:[#allocation9 + $0x10] sm:$0xff]  ;;  %v513_v62 = vld [vmem:[#allocation9 + $0x18] sm:$0xff]  ;;  %v510_v63 = vld [vmem:[#allocation9] sm:$0xff] }
  0x48   : > { %556 = vmatpush.msra.mxu2 %v524_v42  ;;  %576 = vmatpush.msra.mxu3 %v525_v43  ;;  %v511_v0 = vld [vmem:[#allocation9 + $0x8] sm:$0xff]  ;;  %v646_v1 = vld [vmem:[#allocation11 + $0x78] sm:$0xff]  ;;  %v645_v3 = vld [vmem:[#allocation11 + $0x70] sm:$0xff]  ;;  %p1175_p3 = pnand %p1174_p1, %p1389_p0  ;;  %p1180_p12 = por %p1179_p10, %p1178_p9 }
  0x49   : > { %481 = vmatpush.msra.mxu0 %v440_v36  ;;  %501 = vmatpush.msra.mxu1 %v441_v37  ;;  %v662_v2 = vld [vmem:[#allocation11 + $0xf8] sm:$0xff]  ;;  %v661_v4 = vld [vmem:[#allocation11 + $0xf0] sm:$0xff]  ;;  %v644_v5 = vld [vmem:[#allocation11 + $0x68] sm:$0xff] }
  0x4a   : > { %557 = vmatpush.msra.mxu2 %v522_v46  ;;  %577 = vmatpush.msra.mxu3 %v523_v47  ;;  %v660_v6 = vld [vmem:[#allocation11 + $0xe8] sm:$0xff]  ;;  %v643_v7 = vld [vmem:[#allocation11 + $0x60] sm:$0xff]  ;;  %v642_v9 = vld [vmem:[#allocation11 + $0x58] sm:$0xff]  ;;  %p1176_p8 = pneg %p1175_p3 }
  0x4b   : > { %482 = vmatpush.msra.mxu0 %v438_v40  ;;  %502 = vmatpush.msra.mxu1 %v439_v41  ;;  %v659_v8 = vld [vmem:[#allocation11 + $0xe0] sm:$0xff]  ;;  %v658_v10 = vld [vmem:[#allocation11 + $0xd8] sm:$0xff]  ;;  %v641_v11 = vld [vmem:[#allocation11 + $0x50] sm:$0xff] }
  0x4c   : > { %558 = vmatpush.msra.mxu2 %v520_v50  ;;  %578 = vmatpush.msra.mxu3 %v521_v51  ;;  %v657_v12 = vld [vmem:[#allocation11 + $0xd0] sm:$0xff]  ;;  %v640_v13 = vld [vmem:[#allocation11 + $0x48] sm:$0xff]  ;;  %v639_v15 = vld [vmem:[#allocation11 + $0x40] sm:$0xff]  ;;  %p1181_p13 = pnand %p1180_p12, %p1176_p8 }
  0x4d   : > { %483 = vmatpush.msra.mxu0 %v436_v44  ;;  %503 = vmatpush.msra.mxu1 %v437_v45  ;;  %v656_v14 = vld [vmem:[#allocation11 + $0xc8] sm:$0xff]  ;;  %v655_v16 = vld [vmem:[#allocation11 + $0xc0] sm:$0xff]  ;;  %v638_v17 = vld [vmem:[#allocation11 + $0x38] sm:$0xff] }
  0x4e   : > { %559 = vmatpush.msra.mxu2 %v518_v55  ;;  %579 = vmatpush.msra.mxu3 %v519_v56  ;;  %v654_v18 = vld [vmem:[#allocation11 + $0xb8] sm:$0xff]  ;;  %v637_v19 = vld [vmem:[#allocation11 + $0x30] sm:$0xff]  ;;  %v636_v21 = vld [vmem:[#allocation11 + $0x28] sm:$0xff] }
  0x4f   : > { %484 = vmatpush.msra.mxu0 %v434_v48  ;;  %504 = vmatpush.msra.mxu1 %v435_v49  ;;  %v653_v20 = vld [vmem:[#allocation11 + $0xb0] sm:$0xff]  ;;  %v652_v22 = vld [vmem:[#allocation11 + $0xa8] sm:$0xff]  ;;  %v464_v23 = vld [vmem:[#allocation8] sm:$0x3] }
  0x50   : > { %560 = vmatpush.msra.mxu2 %v516_v57  ;;  %580 = vmatpush.msra.mxu3 %v517_v58  ;;  %v635_v24 = vld [vmem:[#allocation11 + $0x20] sm:$0xff]  ;;  %v634_v26 = vld [vmem:[#allocation11 + $0x18] sm:$0xff]  ;;  %v466_v28 = vperm.slane %v464_v23, 0  ;;  %v467_v29 = vperm.slane %v464_v23, 1  ;;  %v633_v30 = vld [vmem:[#allocation11 + $0x10] sm:$0xff] }
  0x51   : > { %485 = vmatpush.msra.mxu0 %v432_v52  ;;  %505 = vmatpush.msra.mxu1 %v433_v53  ;;  %v651_v25 = vld [vmem:[#allocation11 + $0xa0] sm:$0xff]  ;;  %v650_v27 = vld [vmem:[#allocation11 + $0x98] sm:$0xff]  ;;  %v649_v31 = vld [vmem:[#allocation11 + $0x90] sm:$0xff] }
  0x52   : > { %486 = vmatmul.f32.vlgmr.msra.gmra.mxu0 %v431_v54  ;;  %506 = vmatmul.f32.vlgmr.msra.gmra.mxu1 %v431_v54  ;;  %v632_v34 = vld [vmem:[#allocation11 + $0x8] sm:$0xff]  ;;  %v631_v38 = vld [vmem:[#allocation11] sm:$0xff] }
  0x53   : > { %561 = vmatpush.msra.mxu2 %v514_v59  ;;  %581 = vmatpush.msra.mxu3 %v515_v60  ;;  %v648_v35 = vld [vmem:[#allocation11 + $0x88] sm:$0xff]  ;;  %v647_v39 = vld [vmem:[#allocation11 + $0x80] sm:$0xff] }
  0x54   : > { %663 = vmatpush.msrb.mxu0 %v646_v1  ;;  %683 = vmatpush.msrb.mxu1 %v662_v2  ;;  %v542_v49 = vld [vmem:[%s1480_s4] sm:$0x3] }
  0x55   : > { %562 = vmatpush.msra.mxu2 %v512_v61  ;;  %582 = vmatpush.msra.mxu3 %v513_v62  ;;  %v545_v61 = vperm.slane %v542_v49, 1 }
  0x56   : > { %664 = vmatpush.msrb.mxu0 %v645_v3  ;;  %684 = vmatpush.msrb.mxu1 %v661_v4 }
  0x57   : > { %563 = vmatpush.msra.mxu2 %v510_v63  ;;  %583 = vmatpush.msra.mxu3 %v511_v0 }
  0x58   : > { %564 = vmatmul.f32.vlgmr.msra.gmra.mxu2 %v431_v54  ;;  %584 = vmatmul.f32.vlgmr.msra.gmra.mxu3 %v431_v54  ;;  %v544_v54 = vperm.slane %v542_v49, 0 }
  0x59   : > { %665 = vmatpush.msrb.mxu0 %v644_v5  ;;  %685 = vmatpush.msrb.mxu1 %v660_v6 }
  0x5b   : > { %666 = vmatpush.msrb.mxu0 %v643_v7  ;;  %686 = vmatpush.msrb.mxu1 %v659_v8 }
  0x5d   : > { %667 = vmatpush.msrb.mxu0 %v642_v9  ;;  %687 = vmatpush.msrb.mxu1 %v658_v10 }
  0x5f   : > { %668 = vmatpush.msrb.mxu0 %v641_v11  ;;  %688 = vmatpush.msrb.mxu1 %v657_v12 }
  0x61   : > { %669 = vmatpush.msrb.mxu0 %v640_v13  ;;  %689 = vmatpush.msrb.mxu1 %v656_v14  ;;  %v998_v14 = vld [vmem:[%s1482_s6] ss:$0 sm:$0xff] }
  0x63   : > { %670 = vmatpush.msrb.mxu0 %v639_v15  ;;  %690 = vmatpush.msrb.mxu1 %v655_v16 }
  0x65   : > { %671 = vmatpush.msrb.mxu0 %v638_v17  ;;  %691 = vmatpush.msrb.mxu1 %v654_v18 }
  0x67   : > { %672 = vmatpush.msrb.mxu0 %v637_v19  ;;  %692 = vmatpush.msrb.mxu1 %v653_v20 }
  0x69   : > { %673 = vmatpush.msrb.mxu0 %v636_v21  ;;  %693 = vmatpush.msrb.mxu1 %v652_v22 }
  0x6b   : > { %674 = vmatpush.msrb.mxu0 %v635_v24  ;;  %694 = vmatpush.msrb.mxu1 %v651_v25 }
  0x6d   : > { %675 = vmatpush.msrb.mxu0 %v634_v26  ;;  %695 = vmatpush.msrb.mxu1 %v650_v27 }
  0x6f   : > { %676 = vmatpush.msrb.mxu0 %v633_v30  ;;  %696 = vmatpush.msrb.mxu1 %v649_v31 }
  0x71   : > { %677 = vmatpush.msrb.mxu0 %v632_v34  ;;  %697 = vmatpush.msrb.mxu1 %v648_v35 }
  0x73   : > { %678 = vmatpush.msrb.mxu0 %v631_v38  ;;  %698 = vmatpush.msrb.mxu1 %v647_v39 }
  0xcf   : > { %v487_v32 = vpop.f32.mrf.mxu0  ;;  %v507_v33 = vpop.f32.mrf.mxu1 }
  0xd0   : > { %v488_v36 = vadd.f32 %v487_v32, %v466_v28  ;;  %v508_v37 = vadd.f32 %v507_v33, %v467_v29 }
  0xd2   : > { %v885_v40 = vmul.f32 -1.442695, %v488_v36  ;;  %v886_v41 = vmul.f32 -1.442695, %v508_v37 }
  0xd4   : > { %999 = vpow2.f32 %v885_v40 }
  0xd5   : > { %1001 = vpow2.f32 %v886_v41 }
  0xda   : > { %v1000_v42 = vpop.eup %999 }
  0xdb   : > { %v1002_v43 = vpop.eup %1001  ;;  %v594_v44 = vadd.f32 1.0, %v1000_v42  ;;  %v565_v60 = vpop.f32.mrf.mxu2 }
  0xdc   : > { %v595_v45 = vadd.f32 1.0, %v1002_v43  ;;  %v585_v63 = vpop.f32.mrf.mxu3  ;;  %v566_v4 = vadd.f32 %v565_v60, %v544_v54 }
  0xdd   : > { %1003 = vrcp.f32 %v594_v44  ;;  %v607_v52 = vand.u32 2147483648, %v594_v44  ;;  %v605_v56 = vand.u32 2147483647, %v594_v44  ;;  %vm601_vm2 = vweird.f32 %v594_v44 }
  0xde   : > { %1005 = vrcp.f32 %v595_v45  ;;  %v622_v57 = vand.u32 2147483648, %v595_v45  ;;  %v620_v59 = vand.u32 2147483647, %v595_v45  ;;  %vm616_vm4 = vweird.f32 %v595_v45 }
  0xdf   : > { %v608_v0 = vor.u32 1.1754944e-38, %v607_v52  ;;  %vm606_vm5 = vcmp.eq.f32.partialorder %v605_v56, 8.507059e+37  ;;  %v586_v7 = vadd.f32 %v585_v63, %v545_v61 }
  0xe0   : > { %v623_v3 = vor.u32 1.1754944e-38, %v622_v57  ;;  %vm621_vm7 = vcmp.eq.f32.partialorder %v620_v59, 8.507059e+37 }
  0xe3   : > { %v1004_v46 = vpop.eup %1003 }
  0xe4   : > { %v1006_v47 = vpop.eup %1005  ;;  %v597_v48 = vmul.f32 %v1004_v46, %v594_v44  ;;  %vm602_vm0 = vweird.f32 %v1004_v46 }
  0xe5   : > { %v612_v50 = vmul.f32 %v1006_v47, %v595_v45  ;;  %vm617_vm1 = vweird.f32 %v1006_v47  ;;  %vm603_vm3 = vmor %vm601_vm2, %vm602_vm0 }
  0xe6   : > { %v598_v51 = vsub.f32 1.0, %v597_v48  ;;  %vm618_vm6 = vmor %vm616_vm4, %vm617_vm1 }
  0xe7   : > { %v613_v53 = vsub.f32 1.0, %v612_v50 }
  0xe8   : > { %v599_v55 = vmul.f32 %v1004_v46, %v598_v51 }
  0xe9   : > { %v614_v58 = vmul.f32 %v1006_v47, %v613_v53 }
  0xea   : > { %v600_v62 = vadd.f32 %v1004_v46, %v599_v55 }
  0xeb   : > { %v615_v1 = vadd.f32 %v1006_v47, %v614_v58 }
  0xec   : > { %v604_v2 = vsel %vm603_vm3, %v1004_v46, %v600_v62 }
  0xed   : > { %v609_v5 = vsel %vm606_vm5, %v608_v0, %v604_v2  ;;  %v619_v6 = vsel %vm618_vm6, %v1006_v47, %v615_v1 }
  0xee   : > { %v626_v8 = vmul.f32 %v609_v5, %v488_v36  ;;  %v624_v9 = vsel %vm621_vm7, %v623_v3, %v619_v6 }
  0xef   : > { %v627_v10 = vmul.f32 %v624_v9, %v508_v37 }
  0xf0   : > { %v628_v11 = vmul.f32 %v626_v8, %v566_v4 }
  0xf1   : > { %v629_v12 = vmul.f32 %v627_v10, %v586_v7 }
  0xf2   : > { %679 = vmatmul.f32.vlgmr.msrb.gmra.mxu0 %v628_v11 }
  0xf3   : > { %699 = vmatmul.f32.vlgmr.msrb.gmra.mxu1 %v629_v12 }
 0x16f   : > { %v680_v13 = vpop.f32.mrf.mxu0 }
 0x170   : > { %v700_v15 = vpop.f32.mrf.mxu1 }
 0x171   : > { %v701_v16 = vadd.f32 %v700_v15, %v680_v13 }
 0x173   : > { %v713_v17 = vadd.f32 %v998_v14, %v701_v16 }
 0x175   : > { %714 = vst [vmem:[%s416_s10] sm:$0xff] %v713_v17 }
 0x176   : > { %1184 = shalt.err (!%p1181_p13)
}
 0x177   : > { %909 = dma.vmem_to_hbm [thread:$0]  (%p1389_p0), %s729_s23, 128, %s731_s30, %s716_s27  }
 0x178 PF: > { %s742_s9 = sand.u32 1, %s1227_s24   ;;  %p929_p2 = pnand %p875_p6, %p1396_p5 }
 0x179   : > { %s743_s18 = scalar_lea.sflag [#allocation5], %s742_s9 }
 0x17a   : > { %p930_p4 = pneg %p929_p2 }
 0x17c   : > { %1222 = dma.done.wait (%p930_p4), %s743_s18, 128  }
 0x17d   : > { %1224 = vsyncadd (%p930_p4), %s743_s18, 4294967168  ;;  %s25_s29 = sadd.s32 1, %s1247_s29   ;;  %s1492_s24 = smov %s1231_s25 }
 0x17e   : > { %p22_p7 = scmp.ge.s32.totalorder %s25_s29, 4   ;;  %s1493_s25 = smov %s1235_s26 }
 0x17f   : > { %s1494_s26 = smov %s1394_s16  ;;  %s1495_s27 = smov %s1243_s28 }
 0x180   : > { %s1496_s28 = smov %s1498_s22  ;;  %24 = sbr.rel (!%p22_p7) target bundleno = 10 (0xa), region = 124 }
 0x185   :  { %749 = vsyncpa [#allocation4], 1 }
 0x186   :  { %751 = vsyncpa [#allocation4 + $0x1], 1 }
 0x187   :  { %752 = vsyncpa [#allocation7], 1 }
 0x188   :  { %753 = vsyncpa [#allocation10], 1 }
 0x189   :  { %754 = vsyncpa [#allocation5], 1 }
 0x18a   :  { %756 = vsyncpa [#allocation5 + $0x1], 1 }

// kernel: tpu_custom_call.1
= control target key start
LH: loop header
LB: loop body
LE: loop exit
PB: predicated region body
PF: predicated region fallthrough
CT: control target
= control target key end

     0   :  { %s1476_s0 = inlined_call_operand.hbm [shape: f32[16,128], index: 0, kind: input, shape index: {}]   ;;  %s1477_s1 = inlined_call_operand.hbm [shape: f32[128,256], index: 1, kind: input, shape index: {}]   ;;  %s1478_s2 = inlined_call_operand.hbm [shape: f32[1,256], index: 2, kind: input, shape index: {}]   ;;  %s1479_s3 = inlined_call_operand.hbm [shape: f32[128,256], index: 3, kind: input, shape index: {}]   ;;  %s1480_s4 = inlined_call_operand.vmem [shape: f32[1,256], index: 4, kind: input, shape index: {}]   ;;  %s1481_s5 = inlined_call_operand.hbm [shape: f32[256,128], index: 5, kind: input, shape index: {}]   ;;  %s1482_s6 = inlined_call_operand.vmem [shape: f32[1,128], index: 6, kind: input, shape index: {}]   ;;  %s1483_s7 = inlined_call_operand.hbm [shape: f32[16,128], index: 7, kind: output, shape index: {}]  }
   0x1   :  { %1484 = sst [smem:[#allocation17_spill]] %s1477_s1 }
   0x2   :  { %12 = vsyncpa [#allocation4], 0 }
   0x3   :  { %14 = vsyncpa [#allocation4 + $0x1], 0 }
   0x4   :  { %15 = vsyncpa [#allocation7], 0 }
   0x5   :  { %16 = vsyncpa [#allocation10], 0 }
   0x6   :  { %17 = vsyncpa [#allocation5], 0 }
   0x7   :  { %19 = vsyncpa [#allocation5 + $0x1], 0  ;;  %s1297_s24 = smov 0   ;;  %s1299_s25 = smov 0  }
   0x8   :  { %s1301_s26 = smov 0   ;;  %s1303_s27 = smov 0  }
   0x9   :  { %s1305_s28 = smov 0   ;;  %s1307_s29 = smov 0  }
   0xa LB: > { %s867_s30 = sadd.s32 4294967295, %s1247_s29   ;;  %p869_p0 = scmp.ge.s32.totalorder %s1247_s29, 1  ;;  %s1247_s29 = sphi %s1307_s29, %s25_s29   ;;  %s1243_s28 = sphi %s1305_s28, %s1496_s28   ;;  %s1239_s27 = sphi %s1303_s27, %s1495_s27   ;;  %s1235_s26 = sphi %s1301_s26, %s1494_s26   ;;  %s1231_s25 = sphi %s1299_s25, %s1493_s25   ;;  %s1227_s24 = sphi %s1297_s24, %s1492_s24  }
   0xb   : > { %p1331_p1 = scmp.eq.s32.totalorder %s867_s30, 0  ;;  %p245_p2 = scmp.lt.s32.totalorder %s1247_s29, 3 }
   0xc   : > { %s1486_s1 = sld [smem:[#allocation17_spill]]  ;;  %s1249_s13 = smov [#allocation6]  }
   0xd   : > { %p1339_p3 = pnand %p869_p0, %p245_p2  ;;  %s261_s14 = sshll.u32 %s1249_s13, 4  ;;  %s262_s14 = int_to_ptr.vmem [resolvable:$true] %s261_s14 }
   0xe   : > { %p875_p6 = scmp.ge.s32.totalorder %s1247_s29, 2  ;;  %s290_s18 = sshll.u32 %s1479_s3, 4  ;;  %s291_s18 = int_to_ptr.hbm [resolvable:$true] %s290_s18 }
   0xf   : > { %p911_p4 = pneg %p1339_p3  ;;  %s1250_s19 = smov 256  }
  0x10   : > { %s1251_s20 = smov 16   ;;  %s1252_s21 = smov [#allocation9]  }
  0x11   : > { %p1347_p5 = pnand %p911_p4, %p1331_p1  ;;  %s292_s22 = sshll.u32 %s1252_s21, 4  ;;  %s293_s22 = int_to_ptr.vmem [resolvable:$true] %s292_s22 }
  0x12   : > { %s259_s11 = sshll.u32 %s1486_s1, 4  ;;  %s276_s10 = sshll.u32 %s1478_s2, 4  ;;  %s260_s11 = int_to_ptr.hbm [resolvable:$true] %s259_s11  ;;  %s277_s10 = int_to_ptr.hbm [resolvable:$true] %s276_s10 }
  0x13   : > { %914 = dma.hbm_to_vmem [thread:$0]  (!%p1347_p5), %s260_s11, 4096, %s262_s14, [#allocation7], %s1250_s19, %s1250_s19, %s1251_s20  }
  0x14   : > { %920 = dma.hbm_to_vmem [thread:$0]  (!%p1347_p5), %s291_s18, 4096, %s293_s22, [#allocation10], %s1250_s19, %s1250_s19, %s1251_s20  }
  0x15   : > { %s315_s17 = sshll.u32 %s1481_s5, 4  ;;  %s1253_s11 = smov [#allocation8]   ;;  %s316_s17 = int_to_ptr.hbm [resolvable:$true] %s315_s17 }
  0x16   : > { %s278_s14 = sshll.u32 %s1253_s11, 4  ;;  %s1254_s21 = smov [#allocation11]   ;;  %s279_s14 = int_to_ptr.vmem [resolvable:$true] %s278_s14 }
  0x17   : > { %917 = dma.hbm_to_vmem [thread:$0]  (!%p1347_p5), %s277_s10, 32, %s279_s14, [#allocation7]  }
  0x18   : > { %s317_s18 = sshll.u32 %s1254_s21, 4  ;;  %s1255_s19 = smov 128   ;;  %s318_s18 = int_to_ptr.vmem [resolvable:$true] %s317_s18 }
  0x19   : > { %s1256_s20 = smov 8   ;;  %s37_s22 = sadd.s32 1, %s1243_s28 }
  0x1a   : > { %923 = dma.hbm_to_vmem [thread:$0]  (!%p1347_p5), %s316_s17, 4096, %s318_s18, [#allocation10], %s1255_s19, %s1255_s19, %s1256_s20  }
  0x1b   : > { %s868_s23 = sadd.s32 4294967294, %s1247_s29   ;;  %p39_p7 = scmp.ge.s32.totalorder %s37_s22, 2 }
  0x1c   : > { %s44_s9 = sadd.s32 1, %s1235_s26  ;;  %p51_p8 = scmp.ne.s32.totalorder %s1235_s26, %s1231_s25 }
  0x1d   : > { %s1498_s22 = smov (%p39_p7, %s37_s22), 0  ;;  %p52_p9 = scmp.eq.s32.totalorder %s1247_s29, 0 }
  0x1e   : > { %p57_p10 = scmp.ne.s32.totalorder %s1231_s25, %s1227_s24  ;;  %s41_s10 = ssub.s32 %s1243_s28, %s1498_s22 }
  0x1f   : > { %p232_p11 = scmp.eq.s32.totalorder %s867_s30, 1  ;;  %p42_p12 = scmp.eq.s32.totalorder %s41_s10, 0 }
  0x20   : > { %p1385_p13 = por %p1331_p1, %p57_p10  ;;  %p238_p2 = scmp.eq.s32.totalorder %s868_s23, 1 }
  0x21   : > { %p1389_p0 = por %p232_p11, %p51_p8  ;;  %p53_p4 = por %p52_p9, %p51_p8 }
  0x22   : > { %s1394_s16 = scalar_select %p42_p12, %s1235_s26, %s44_s9  }
  0x23   : > { %p1396_p5 = por %p238_p2, %p57_p10  ;;  %s334_s11 = sand.u32 1, %s1235_s26  }
  0x24   : > { %s877_s30 = sshll.u32 %s1243_s28, 3  ;;  %p936_p7 = scmp.lt.s32.totalorder %s1247_s29, 2 }
  0x25   : > { %s876_s14 = sshll.u32 %s334_s11, 3  ;;  %s342_s19 = scalar_lea.hbm %s1476_s0, %s877_s30 }
  0x26   : > { %s344_s20 = sshll.u32 %s342_s19, 4  ;;  %s338_s10 = scalar_lea.vmem [#allocation3], %s876_s14  ;;  %s345_s20 = int_to_ptr.hbm [resolvable:$true] %s344_s20 }
  0x27   : > { %s346_s1 = sshll.u32 %s338_s10, 4  ;;  %p925_p11 = pnand %p936_p7, %p53_p4  ;;  %s347_s1 = int_to_ptr.vmem [resolvable:$true] %s346_s1 }
  0x28   : > { %s335_s23 = scalar_lea.sflag [#allocation4], %s334_s11  ;;  %355 = sbr.rel (%p1339_p3) target bundleno = 376 (0x178), region = 48 }
  0x29   : > { %927 = dma.hbm_to_vmem [thread:$0]  (!%p925_p11), %s345_s20, 128, %s347_s1, %s335_s23  }
  0x2a   : > { %s1409_s9 = sand.u32 (!%p1339_p3), 1, %s1231_s25  }
  0x2b   : > { %s879_s21 = sshll.u32 (!%p1339_p3), %s1409_s9, 3  ;;  %s358_s30 = scalar_lea.sflag (!%p1339_p3), [#allocation4], %s1409_s9 }
  0x2c   : > { %s1415_s14 = scalar_lea.vmem (!%p1339_p3), [#allocation3], %s879_s21 }
  0x2d   : > { %1210 = dma.done.wait (%p1385_p13), %s358_s30, 128  }
  0x2e   : > { %1212 = vsyncadd (%p1385_p13), %s358_s30, 4294967168 }
  0x2f   : > { %1214 = dma.done.wait (%p1331_p1), [#allocation7], 4128  }
  0x30   : > { %1216 = vsyncadd (%p1331_p1), [#allocation7], 4294963168 }
  0x31   : > { %1218 = dma.done.wait (%p1331_p1), [#allocation10], 8192  }
  0x32   : > { %1220 = vsyncadd (%p1331_p1), [#allocation10], 4294959104  ;;  %v462_v0 = vld [vmem:[#allocation6 + $0xf0] sm:$0xff]  ;;  %v463_v1 = vld [vmem:[#allocation6 + $0xf8] sm:$0xff]  ;;  %s888_s12 = sshll.u32 %s1239_s27, 3  ;;  %s416_s10 = scalar_lea.vmem [#allocation12], %s879_s21 }
  0x33   : > { %v460_v2 = vld [vmem:[#allocation6 + $0xe0] sm:$0xff]  ;;  %470 = vmatpush.msra.mxu0 %v462_v0  ;;  %490 = vmatpush.msra.mxu1 %v463_v1  ;;  %v461_v3 = vld [vmem:[#allocation6 + $0xe8] sm:$0xff]  ;;  %v458_v4 = vld [vmem:[#allocation6 + $0xd0] sm:$0xff]  ;;  %s726_s18 = scalar_lea.hbm %s1483_s7, %s888_s12  ;;  %s728_s23 = sshll.u32 %s416_s10, 4  ;;  %s729_s23 = int_to_ptr.vmem [resolvable:$true] %s728_s23 }
  0x34   : > { %v459_v5 = vld [vmem:[#allocation6 + $0xd8] sm:$0xff]  ;;  %v456_v6 = vld [vmem:[#allocation6 + $0xc0] sm:$0xff]  ;;  %v457_v7 = vld [vmem:[#allocation6 + $0xc8] sm:$0xff]  ;;  %s730_s30 = sshll.u32 %s726_s18, 4  ;;  %s716_s27 = scalar_lea.sflag [#allocation5], %s1409_s9  ;;  %s731_s30 = int_to_ptr.hbm [resolvable:$true] %s730_s30 }
  0x35   : > { %471 = vmatpush.msra.mxu0 %v460_v2  ;;  %491 = vmatpush.msra.mxu1 %v461_v3  ;;  %v454_v8 = vld [vmem:[#allocation6 + $0xb0] sm:$0xff]  ;;  %v455_v9 = vld [vmem:[#allocation6 + $0xb8] sm:$0xff]  ;;  %v452_v10 = vld [vmem:[#allocation6 + $0xa0] sm:$0xff]  ;;  %s1177_s15 = scalar_lea.hbm %s1483_s7, 16 }
  0x36   : > { %v453_v11 = vld [vmem:[#allocation6 + $0xa8] sm:$0xff]  ;;  %v540_v12 = vld [vmem:[#allocation9 + $0xf0] sm:$0xff]  ;;  %v541_v14 = vld [vmem:[#allocation9 + $0xf8] sm:$0xff] }
  0x37   : > { %472 = vmatpush.msra.mxu0 %v458_v4  ;;  %492 = vmatpush.msra.mxu1 %v459_v5  ;;  %v450_v13 = vld [vmem:[#allocation6 + $0x90] sm:$0xff]  ;;  %v451_v15 = vld [vmem:[#allocation6 + $0x98] sm:$0xff]  ;;  %v538_v16 = vld [vmem:[#allocation9 + $0xe0] sm:$0xff] }
  0x38   : > { %548 = vmatpush.msra.mxu2 %v540_v12  ;;  %568 = vmatpush.msra.mxu3 %v541_v14  ;;  %v539_v17 = vld [vmem:[#allocation9 + $0xe8] sm:$0xff]  ;;  %v536_v18 = vld [vmem:[#allocation9 + $0xd0] sm:$0xff]  ;;  %v537_v19 = vld [vmem:[#allocation9 + $0xd8] sm:$0xff] }
  0x39   : > { %473 = vmatpush.msra.mxu0 %v456_v6  ;;  %493 = vmatpush.msra.mxu1 %v457_v7  ;;  %v448_v20 = vld [vmem:[#allocation6 + $0x80] sm:$0xff]  ;;  %v449_v21 = vld [vmem:[#allocation6 + $0x88] sm:$0xff]  ;;  %v446_v24 = vld [vmem:[#allocation6 + $0x70] sm:$0xff] }
  0x3a   : > { %549 = vmatpush.msra.mxu2 %v538_v16  ;;  %569 = vmatpush.msra.mxu3 %v539_v17  ;;  %v534_v22 = vld [vmem:[#allocation9 + $0xc0] sm:$0xff]  ;;  %v535_v23 = vld [vmem:[#allocation9 + $0xc8] sm:$0xff]  ;;  %v447_v25 = vld [vmem:[#allocation6 + $0x78] sm:$0xff] }
  0x3b   : > { %474 = vmatpush.msra.mxu0 %v454_v8  ;;  %494 = vmatpush.msra.mxu1 %v455_v9  ;;  %v532_v26 = vld [vmem:[#allocation9 + $0xb0] sm:$0xff]  ;;  %v533_v27 = vld [vmem:[#allocation9 + $0xb8] sm:$0xff]  ;;  %v445_v29 = vld [vmem:[#allocation6 + $0x68] sm:$0xff] }
  0x3c   : > { %550 = vmatpush.msra.mxu2 %v536_v18  ;;  %570 = vmatpush.msra.mxu3 %v537_v19  ;;  %v444_v28 = vld [vmem:[#allocation6 + $0x60] sm:$0xff]  ;;  %v531_v31 = vld [vmem:[#allocation9 + $0xa8] sm:$0xff]  ;;  %v443_v33 = vld [vmem:[#allocation6 + $0x58] sm:$0xff] }
  0x3d   : > { %475 = vmatpush.msra.mxu0 %v452_v10  ;;  %495 = vmatpush.msra.mxu1 %v453_v11  ;;  %v530_v30 = vld [vmem:[#allocation9 + $0xa0] sm:$0xff]  ;;  %v442_v32 = vld [vmem:[#allocation6 + $0x50] sm:$0xff]  ;;  %v529_v35 = vld [vmem:[#allocation9 + $0x98] sm:$0xff] }
  0x3e   : > { %551 = vmatpush.msra.mxu2 %v534_v22  ;;  %571 = vmatpush.msra.mxu3 %v535_v23  ;;  %v528_v34 = vld [vmem:[#allocation9 + $0x90] sm:$0xff]  ;;  %v440_v36 = vld [vmem:[#allocation6 + $0x40] sm:$0xff]  ;;  %v441_v37 = vld [vmem:[#allocation6 + $0x48] sm:$0xff] }
  0x3f   : > { %476 = vmatpush.msra.mxu0 %v450_v13  ;;  %496 = vmatpush.msra.mxu1 %v451_v15  ;;  %v526_v38 = vld [vmem:[#allocation9 + $0x80] sm:$0xff]  ;;  %v527_v39 = vld [vmem:[#allocation9 + $0x88] sm:$0xff]  ;;  %v439_v41 = vld [vmem:[#allocation6 + $0x38] sm:$0xff] }
  0x40   : > { %552 = vmatpush.msra.mxu2 %v532_v26  ;;  %572 = vmatpush.msra.mxu3 %v533_v27  ;;  %v438_v40 = vld [vmem:[#allocation6 + $0x30] sm:$0xff]  ;;  %v525_v43 = vld [vmem:[#allocation9 + $0x78] sm:$0xff]  ;;  %v437_v45 = vld [vmem:[#allocation6 + $0x28] sm:$0xff] }
  0x41   : > { %477 = vmatpush.msra.mxu0 %v448_v20  ;;  %497 = vmatpush.msra.mxu1 %v449_v21  ;;  %v524_v42 = vld [vmem:[#allocation9 + $0x70] sm:$0xff]  ;;  %v436_v44 = vld [vmem:[#allocation6 + $0x20] sm:$0xff]  ;;  %v523_v47 = vld [vmem:[#allocation9 + $0x68] sm:$0xff] }
  0x42   : > { %553 = vmatpush.msra.mxu2 %v530_v30  ;;  %573 = vmatpush.msra.mxu3 %v531_v31  ;;  %v522_v46 = vld [vmem:[#allocation9 + $0x60] sm:$0xff]  ;;  %v434_v48 = vld [vmem:[#allocation6 + $0x10] sm:$0xff]  ;;  %v435_v49 = vld [vmem:[#allocation6 + $0x18] sm:$0xff] }
  0x43   : > { %478 = vmatpush.msra.mxu0 %v446_v24  ;;  %498 = vmatpush.msra.mxu1 %v447_v25  ;;  %v520_v50 = vld [vmem:[#allocation9 + $0x50] sm:$0xff]  ;;  %v521_v51 = vld [vmem:[#allocation9 + $0x58] sm:$0xff]  ;;  %v433_v53 = vld [vmem:[#allocation6 + $0x8] sm:$0xff] }
  0x44   : > { %554 = vmatpush.msra.mxu2 %v528_v34  ;;  %574 = vmatpush.msra.mxu3 %v529_v35  ;;  %v432_v52 = vld [vmem:[#allocation6] sm:$0xff]  ;;  %v431_v54 = vld [vmem:[%s1415_s14] sm:$0xff]  ;;  %s1171_s14 = sshra.s32 %s731_s30, 4  ;;  %s1172_s14 = int_to_ptr.hbm [resolvable:$true] %s1171_s14 }
  0x45   : > { %479 = vmatpush.msra.mxu0 %v444_v28  ;;  %499 = vmatpush.msra.mxu1 %v445_v29  ;;  %v518_v55 = vld [vmem:[#allocation9 + $0x40] sm:$0xff]  ;;  %v519_v56 = vld [vmem:[#allocation9 + $0x48] sm:$0xff]  ;;  %v516_v57 = vld [vmem:[#allocation9 + $0x30] sm:$0xff]  ;;  %s1173_s1 = scalar_lea.hbm %s1172_s14, 8  ;;  %p1178_p9 = scmp.lt.s32.totalorder %s1172_s14, %s1483_s7 }
  0x46   : > { %555 = vmatpush.msra.mxu2 %v526_v38  ;;  %575 = vmatpush.msra.mxu3 %v527_v39  ;;  %v517_v58 = vld [vmem:[#allocation9 + $0x38] sm:$0xff]  ;;  %v514_v59 = vld [vmem:[#allocation9 + $0x20] sm:$0xff]  ;;  %v515_v60 = vld [vmem:[#allocation9 + $0x28] sm:$0xff]  ;;  %p1174_p1 = scmp.ne.s32.totalorder %s1172_s14, %s1173_s1  ;;  %p1179_p10 = scmp.lt.s32.totalorder %s1177_s15, %s1173_s1 }
  0x47   : > { %480 = vmatpush.msra.mxu0 %v442_v32  ;;  %500 = vmatpush.msra.mxu1 %v443_v33  ;;  %v512_v61 = vld [vmem:[#allocation9 + $0x10] sm:$0xff]  ;;  %v513_v62 = vld [vmem:[#allocation9 + $0x18] sm:$0xff]  ;;  %v510_v63 = vld [vmem:[#allocation9] sm:$0xff] }
  0x48   : > { %556 = vmatpush.msra.mxu2 %v524_v42  ;;  %576 = vmatpush.msra.mxu3 %v525_v43  ;;  %v511_v0 = vld [vmem:[#allocation9 + $0x8] sm:$0xff]  ;;  %v646_v1 = vld [vmem:[#allocation11 + $0x78] sm:$0xff]  ;;  %v645_v3 = vld [vmem:[#allocation11 + $0x70] sm:$0xff]  ;;  %p1175_p3 = pnand %p1174_p1, %p1389_p0  ;;  %p1180_p12 = por %p1179_p10, %p1178_p9 }
  0x49   : > { %481 = vmatpush.msra.mxu0 %v440_v36  ;;  %501 = vmatpush.msra.mxu1 %v441_v37  ;;  %v662_v2 = vld [vmem:[#allocation11 + $0xf8] sm:$0xff]  ;;  %v661_v4 = vld [vmem:[#allocation11 + $0xf0] sm:$0xff]  ;;  %v644_v5 = vld [vmem:[#allocation11 + $0x68] sm:$0xff] }
  0x4a   : > { %557 = vmatpush.msra.mxu2 %v522_v46  ;;  %577 = vmatpush.msra.mxu3 %v523_v47  ;;  %v660_v6 = vld [vmem:[#allocation11 + $0xe8] sm:$0xff]  ;;  %v643_v7 = vld [vmem:[#allocation11 + $0x60] sm:$0xff]  ;;  %v642_v9 = vld [vmem:[#allocation11 + $0x58] sm:$0xff]  ;;  %p1176_p8 = pneg %p1175_p3 }
  0x4b   : > { %482 = vmatpush.msra.mxu0 %v438_v40  ;;  %502 = vmatpush.msra.mxu1 %v439_v41  ;;  %v659_v8 = vld [vmem:[#allocation11 + $0xe0] sm:$0xff]  ;;  %v658_v10 = vld [vmem:[#allocation11 + $0xd8] sm:$0xff]  ;;  %v641_v11 = vld [vmem:[#allocation11 + $0x50] sm:$0xff] }
  0x4c   : > { %558 = vmatpush.msra.mxu2 %v520_v50  ;;  %578 = vmatpush.msra.mxu3 %v521_v51  ;;  %v657_v12 = vld [vmem:[#allocation11 + $0xd0] sm:$0xff]  ;;  %v640_v13 = vld [vmem:[#allocation11 + $0x48] sm:$0xff]  ;;  %v639_v15 = vld [vmem:[#allocation11 + $0x40] sm:$0xff]  ;;  %p1181_p13 = pnand %p1180_p12, %p1176_p8 }
  0x4d   : > { %483 = vmatpush.msra.mxu0 %v436_v44  ;;  %503 = vmatpush.msra.mxu1 %v437_v45  ;;  %v656_v14 = vld [vmem:[#allocation11 + $0xc8] sm:$0xff]  ;;  %v655_v16 = vld [vmem:[#allocation11 + $0xc0] sm:$0xff]  ;;  %v638_v17 = vld [vmem:[#allocation11 + $0x38] sm:$0xff] }
  0x4e   : > { %559 = vmatpush.msra.mxu2 %v518_v55  ;;  %579 = vmatpush.msra.mxu3 %v519_v56  ;;  %v654_v18 = vld [vmem:[#allocation11 + $0xb8] sm:$0xff]  ;;  %v637_v19 = vld [vmem:[#allocation11 + $0x30] sm:$0xff]  ;;  %v636_v21 = vld [vmem:[#allocation11 + $0x28] sm:$0xff] }
  0x4f   : > { %484 = vmatpush.msra.mxu0 %v434_v48  ;;  %504 = vmatpush.msra.mxu1 %v435_v49  ;;  %v653_v20 = vld [vmem:[#allocation11 + $0xb0] sm:$0xff]  ;;  %v652_v22 = vld [vmem:[#allocation11 + $0xa8] sm:$0xff]  ;;  %v464_v23 = vld [vmem:[#allocation8] sm:$0x3] }
  0x50   : > { %560 = vmatpush.msra.mxu2 %v516_v57  ;;  %580 = vmatpush.msra.mxu3 %v517_v58  ;;  %v635_v24 = vld [vmem:[#allocation11 + $0x20] sm:$0xff]  ;;  %v634_v26 = vld [vmem:[#allocation11 + $0x18] sm:$0xff]  ;;  %v466_v28 = vperm.slane %v464_v23, 0  ;;  %v467_v29 = vperm.slane %v464_v23, 1  ;;  %v633_v30 = vld [vmem:[#allocation11 + $0x10] sm:$0xff] }
  0x51   : > { %485 = vmatpush.msra.mxu0 %v432_v52  ;;  %505 = vmatpush.msra.mxu1 %v433_v53  ;;  %v651_v25 = vld [vmem:[#allocation11 + $0xa0] sm:$0xff]  ;;  %v650_v27 = vld [vmem:[#allocation11 + $0x98] sm:$0xff]  ;;  %v649_v31 = vld [vmem:[#allocation11 + $0x90] sm:$0xff] }
  0x52   : > { %486 = vmatmul.f32.vlgmr.msra.gmra.mxu0 %v431_v54  ;;  %506 = vmatmul.f32.vlgmr.msra.gmra.mxu1 %v431_v54  ;;  %v632_v34 = vld [vmem:[#allocation11 + $0x8] sm:$0xff]  ;;  %v631_v38 = vld [vmem:[#allocation11] sm:$0xff] }
  0x53   : > { %561 = vmatpush.msra.mxu2 %v514_v59  ;;  %581 = vmatpush.msra.mxu3 %v515_v60  ;;  %v648_v35 = vld [vmem:[#allocation11 + $0x88] sm:$0xff]  ;;  %v647_v39 = vld [vmem:[#allocation11 + $0x80] sm:$0xff] }
  0x54   : > { %663 = vmatpush.msrb.mxu0 %v646_v1  ;;  %683 = vmatpush.msrb.mxu1 %v662_v2  ;;  %v542_v49 = vld [vmem:[%s1480_s4] sm:$0x3] }
  0x55   : > { %562 = vmatpush.msra.mxu2 %v512_v61  ;;  %582 = vmatpush.msra.mxu3 %v513_v62  ;;  %v545_v61 = vperm.slane %v542_v49, 1 }
  0x56   : > { %664 = vmatpush.msrb.mxu0 %v645_v3  ;;  %684 = vmatpush.msrb.mxu1 %v661_v4 }
  0x57   : > { %563 = vmatpush.msra.mxu2 %v510_v63  ;;  %583 = vmatpush.msra.mxu3 %v511_v0 }
  0x58   : > { %564 = vmatmul.f32.vlgmr.msra.gmra.mxu2 %v431_v54  ;;  %584 = vmatmul.f32.vlgmr.msra.gmra.mxu3 %v431_v54  ;;  %v544_v54 = vperm.slane %v542_v49, 0 }
  0x59   : > { %665 = vmatpush.msrb.mxu0 %v644_v5  ;;  %685 = vmatpush.msrb.mxu1 %v660_v6 }
  0x5b   : > { %666 = vmatpush.msrb.mxu0 %v643_v7  ;;  %686 = vmatpush.msrb.mxu1 %v659_v8 }
  0x5d   : > { %667 = vmatpush.msrb.mxu0 %v642_v9  ;;  %687 = vmatpush.msrb.mxu1 %v658_v10 }
  0x5f   : > { %668 = vmatpush.msrb.mxu0 %v641_v11  ;;  %688 = vmatpush.msrb.mxu1 %v657_v12 }
  0x61   : > { %669 = vmatpush.msrb.mxu0 %v640_v13  ;;  %689 = vmatpush.msrb.mxu1 %v656_v14  ;;  %v998_v14 = vld [vmem:[%s1482_s6] ss:$0 sm:$0xff] }
  0x63   : > { %670 = vmatpush.msrb.mxu0 %v639_v15  ;;  %690 = vmatpush.msrb.mxu1 %v655_v16 }
  0x65   : > { %671 = vmatpush.msrb.mxu0 %v638_v17  ;;  %691 = vmatpush.msrb.mxu1 %v654_v18 }
  0x67   : > { %672 = vmatpush.msrb.mxu0 %v637_v19  ;;  %692 = vmatpush.msrb.mxu1 %v653_v20 }
  0x69   : > { %673 = vmatpush.msrb.mxu0 %v636_v21  ;;  %693 = vmatpush.msrb.mxu1 %v652_v22 }
  0x6b   : > { %674 = vmatpush.msrb.mxu0 %v635_v24  ;;  %694 = vmatpush.msrb.mxu1 %v651_v25 }
  0x6d   : > { %675 = vmatpush.msrb.mxu0 %v634_v26  ;;  %695 = vmatpush.msrb.mxu1 %v650_v27 }
  0x6f   : > { %676 = vmatpush.msrb.mxu0 %v633_v30  ;;  %696 = vmatpush.msrb.mxu1 %v649_v31 }
  0x71   : > { %677 = vmatpush.msrb.mxu0 %v632_v34  ;;  %697 = vmatpush.msrb.mxu1 %v648_v35 }
  0x73   : > { %678 = vmatpush.msrb.mxu0 %v631_v38  ;;  %698 = vmatpush.msrb.mxu1 %v647_v39 }
  0xcf   : > { %v487_v32 = vpop.f32.mrf.mxu0  ;;  %v507_v33 = vpop.f32.mrf.mxu1 }
  0xd0   : > { %v488_v36 = vadd.f32 %v487_v32, %v466_v28  ;;  %v508_v37 = vadd.f32 %v507_v33, %v467_v29 }
  0xd2   : > { %v885_v40 = vmul.f32 -1.442695, %v488_v36  ;;  %v886_v41 = vmul.f32 -1.442695, %v508_v37 }
  0xd4   : > { %999 = vpow2.f32 %v885_v40 }
  0xd5   : > { %1001 = vpow2.f32 %v886_v41 }
  0xda   : > { %v1000_v42 = vpop.eup %999 }
  0xdb   : > { %v1002_v43 = vpop.eup %1001  ;;  %v594_v44 = vadd.f32 1.0, %v1000_v42  ;;  %v565_v60 = vpop.f32.mrf.mxu2 }
  0xdc   : > { %v595_v45 = vadd.f32 1.0, %v1002_v43  ;;  %v585_v63 = vpop.f32.mrf.mxu3  ;;  %v566_v4 = vadd.f32 %v565_v60, %v544_v54 }
  0xdd   : > { %1003 = vrcp.f32 %v594_v44  ;;  %v607_v52 = vand.u32 2147483648, %v594_v44  ;;  %v605_v56 = vand.u32 2147483647, %v594_v44  ;;  %vm601_vm2 = vweird.f32 %v594_v44 }
  0xde   : > { %1005 = vrcp.f32 %v595_v45  ;;  %v622_v57 = vand.u32 2147483648, %v595_v45  ;;  %v620_v59 = vand.u32 2147483647, %v595_v45  ;;  %vm616_vm4 = vweird.f32 %v595_v45 }
  0xdf   : > { %v608_v0 = vor.u32 1.1754944e-38, %v607_v52  ;;  %vm606_vm5 = vcmp.eq.f32.partialorder %v605_v56, 8.507059e+37  ;;  %v586_v7 = vadd.f32 %v585_v63, %v545_v61 }
  0xe0   : > { %v623_v3 = vor.u32 1.1754944e-38, %v622_v57  ;;  %vm621_vm7 = vcmp.eq.f32.partialorder %v620_v59, 8.507059e+37 }
  0xe3   : > { %v1004_v46 = vpop.eup %1003 }
  0xe4   : > { %v1006_v47 = vpop.eup %1005  ;;  %v597_v48 = vmul.f32 %v1004_v46, %v594_v44  ;;  %vm602_vm0 = vweird.f32 %v1004_v46 }
  0xe5   : > { %v612_v50 = vmul.f32 %v1006_v47, %v595_v45  ;;  %vm617_vm1 = vweird.f32 %v1006_v47  ;;  %vm603_vm3 = vmor %vm601_vm2, %vm602_vm0 }
  0xe6   : > { %v598_v51 = vsub.f32 1.0, %v597_v48  ;;  %vm618_vm6 = vmor %vm616_vm4, %vm617_vm1 }
  0xe7   : > { %v613_v53 = vsub.f32 1.0, %v612_v50 }
  0xe8   : > { %v599_v55 = vmul.f32 %v1004_v46, %v598_v51 }
  0xe9   : > { %v614_v58 = vmul.f32 %v1006_v47, %v613_v53 }
  0xea   : > { %v600_v62 = vadd.f32 %v1004_v46, %v599_v55 }
  0xeb   : > { %v615_v1 = vadd.f32 %v1006_v47, %v614_v58 }
  0xec   : > { %v604_v2 = vsel %vm603_vm3, %v1004_v46, %v600_v62 }
  0xed   : > { %v609_v5 = vsel %vm606_vm5, %v608_v0, %v604_v2  ;;  %v619_v6 = vsel %vm618_vm6, %v1006_v47, %v615_v1 }
  0xee   : > { %v626_v8 = vmul.f32 %v609_v5, %v488_v36  ;;  %v624_v9 = vsel %vm621_vm7, %v623_v3, %v619_v6 }
  0xef   : > { %v627_v10 = vmul.f32 %v624_v9, %v508_v37 }
  0xf0   : > { %v628_v11 = vmul.f32 %v626_v8, %v566_v4 }
  0xf1   : > { %v629_v12 = vmul.f32 %v627_v10, %v586_v7 }
  0xf2   : > { %679 = vmatmul.f32.vlgmr.msrb.gmra.mxu0 %v628_v11 }
  0xf3   : > { %699 = vmatmul.f32.vlgmr.msrb.gmra.mxu1 %v629_v12 }
 0x16f   : > { %v680_v13 = vpop.f32.mrf.mxu0 }
 0x170   : > { %v700_v15 = vpop.f32.mrf.mxu1 }
 0x171   : > { %v701_v16 = vadd.f32 %v700_v15, %v680_v13 }
 0x173   : > { %v713_v17 = vadd.f32 %v998_v14, %v701_v16 }
 0x175   : > { %714 = vst [vmem:[%s416_s10] sm:$0xff] %v713_v17 }
 0x176   : > { %1184 = shalt.err (!%p1181_p13)
}
 0x177   : > { %909 = dma.vmem_to_hbm [thread:$0]  (%p1389_p0), %s729_s23, 128, %s731_s30, %s716_s27  }
 0x178 PF: > { %s742_s9 = sand.u32 1, %s1227_s24   ;;  %p929_p2 = pnand %p875_p6, %p1396_p5 }
 0x179   : > { %s743_s18 = scalar_lea.sflag [#allocation5], %s742_s9 }
 0x17a   : > { %p930_p4 = pneg %p929_p2 }
 0x17c   : > { %1222 = dma.done.wait (%p930_p4), %s743_s18, 128  }
 0x17d   : > { %1224 = vsyncadd (%p930_p4), %s743_s18, 4294967168  ;;  %s25_s29 = sadd.s32 1, %s1247_s29   ;;  %s1492_s24 = smov %s1231_s25 }
 0x17e   : > { %p22_p7 = scmp.ge.s32.totalorder %s25_s29, 4   ;;  %s1493_s25 = smov %s1235_s26 }
 0x17f   : > { %s1494_s26 = smov %s1394_s16  ;;  %s1495_s27 = smov %s1243_s28 }
 0x180   : > { %s1496_s28 = smov %s1498_s22  ;;  %24 = sbr.rel (!%p22_p7) target bundleno = 10 (0xa), region = 124 }
 0x185   :  { %749 = vsyncpa [#allocation4], 1 }
 0x186   :  { %751 = vsyncpa [#allocation4 + $0x1], 1 }
 0x187   :  { %752 = vsyncpa [#allocation7], 1 }
 0x188   :  { %753 = vsyncpa [#allocation10], 1 }
 0x189   :  { %754 = vsyncpa [#allocation5], 1 }
 0x18a   :  { %756 = vsyncpa [#allocation5 + $0x1], 1 }

</bundles_post_ra>
